<compile_context>
chip_gen: v5e
topology: v5e:2x2
jax: 0.10.0
libtpu: 0.0.40
codegen_flags: <defaults>
</compile_context>

<pallas_src>
import math

import jax
import jax.numpy as jnp
from jax.experimental import pallas as pl
from jax.experimental.pallas import tpu as pltpu

LN_EPS = 1e-5


def _make_stack_kernel(E, H, S, Bt, FF):
    """Pallas kernel: one grid step = one encoder layer applied to one batch chunk."""
    Dh = E // H
    T = Bt * S  # token rows per chunk

    def kernel(x_ref,                       # (Bt, S, E) f32 input chunk (read only at d == 0)
               in_w_ref, in_b_ref,          # QKV projection: (E, 3E) bf16, (1, 3E) f32 (Q cols pre-scaled)
               out_w_ref, out_b_ref,        # attn out proj:  (E, E) bf16,  (1, E) f32
               ln1_w_ref, ln1_b_ref,        # norm1:          (1, E),  (1, E) f32
               ln2_w_ref, ln2_b_ref,        # norm2:          (1, E),  (1, E) f32
               ff1_w_ref, ff1_b_ref,        # linear1:        (E, FF) bf16, (1, FF) f32
               ff2_w_ref, ff2_b_ref,        # linear2:        (FF, E) bf16, (1, E) f32
               y_ref,                       # (Bt, S, E) output block == resident residual stream
               qkv_s,                       # VMEM (Bt, S, 3E) bf16 scratch
               pv_s,                        # VMEM (Bt, S, E)  bf16 scratch
               ff_s):                       # VMEM (T, FF)     bf16 scratch
        d = pl.program_id(1)

        # Initialize the residual stream from the input block only at the first layer.
        @pl.when(d == 0)
        def _():
            y_ref[...] = x_ref[...].astype(y_ref.dtype)

        x = y_ref[...].reshape(T, E).astype(jnp.float32)      # (T, E) residual stream

        def layer_norm(v, w, b):
            mu = jnp.mean(v, axis=-1, keepdims=True)
            c = v - mu
            var = jnp.mean(c * c, axis=-1, keepdims=True)
            return c * jax.lax.rsqrt(var + LN_EPS) * w + b

        # ---- self-attention block (norm_first): x = x + MHA(LN1(x)) ----
        h = layer_norm(x, ln1_w_ref[...], ln1_b_ref[...]).astype(jnp.bfloat16)
        qkv = jnp.dot(h, in_w_ref[...],
                      preferred_element_type=jnp.float32) + in_b_ref[...]   # (T, 3E) f32
        qkv_s[...] = qkv.reshape(Bt, S, 3 * E).astype(jnp.bfloat16)

        # Per-head attention; PV results land in lane slices of pv_s so the output
        # projection runs as ONE full-K (E) matmul afterwards.
        for hh in range(H):
            qh = qkv_s[:, :, 0 * E + hh * Dh: 0 * E + (hh + 1) * Dh]        # (Bt, S, Dh) bf16
            kh = qkv_s[:, :, 1 * E + hh * Dh: 1 * E + (hh + 1) * Dh]
            vh = qkv_s[:, :, 2 * E + hh * Dh: 2 * E + (hh + 1) * Dh]
            s = jnp.einsum('bqd,bkd->bqk', qh, kh,
                           preferred_element_type=jnp.float32)               # (Bt, S, S)
            s = s - jnp.max(s, axis=-1, keepdims=True)
            p = jnp.exp(s)
            p = p * pl.reciprocal(jnp.sum(p, axis=-1, keepdims=True), approx=True)
            pv = jnp.einsum('bqk,bkd->bqd', p.astype(jnp.bfloat16), vh,
                            preferred_element_type=jnp.float32)              # (Bt, S, Dh)
            pv_s[:, :, hh * Dh:(hh + 1) * Dh] = pv.astype(jnp.bfloat16)

        attn = jnp.dot(pv_s[...].reshape(T, E), out_w_ref[...],
                       preferred_element_type=jnp.float32) + out_b_ref[...]  # (T, E)
        x = x + attn

        # ---- feed-forward block (norm_first): x = x + FFN(LN2(x)) ----
        h2 = layer_norm(x, ln2_w_ref[...], ln2_b_ref[...]).astype(jnp.bfloat16)
        ff = jnp.dot(h2, ff1_w_ref[...],
                     preferred_element_type=jnp.float32) + ff1_b_ref[...]     # (T, FF)
        ff_s[...] = jnp.maximum(ff, 0.0).astype(jnp.bfloat16)                 # ReLU, bf16 staging
        ff2 = jnp.dot(ff_s[...], ff2_w_ref[...],
                      preferred_element_type=jnp.float32) + ff2_b_ref[...]
        x = x + ff2

        # Residual stream write-back (VMEM store; HBM writeback only when the
        # batch-chunk index advances).
        y_ref[...] = x.reshape(Bt, S, E).astype(y_ref.dtype)

    return kernel


_WEIGHT_ORDER = ("in_w", "in_b", "out_w", "out_b",
                 "ln1_w", "ln1_b", "ln2_w", "ln2_b",
                 "ff1_w", "ff1_b", "ff2_w", "ff2_b")


def transformer_encoder(x, params, heads, *, block_batch=None, min_chunks=2):
    """Full depth-fused encoder over x of shape (B, S, E). params are depth-stacked."""
    B, S, E = x.shape
    depth = params["in_w"].shape[0]
    FF = params["ff1_w"].shape[2]
    assert E % heads == 0
    Dh = E // heads

    # Fold 1/sqrt(Dh) into the Q columns of the QKV projection (host-side, one-time).
    scale = 1.0 / math.sqrt(Dh)
    q_scale = jnp.concatenate([jnp.full((E,), scale, jnp.float32),
                               jnp.ones((2 * E,), jnp.float32)])
    in_w = (params["in_w"].astype(jnp.float32) * q_scale).astype(params["in_w"].dtype)
    in_b = (params["in_b"].astype(jnp.float32) * q_scale).astype(params["in_b"].dtype)
    params = dict(params, in_w=in_w, in_b=in_b)

    # Batch-chunk heuristic: ~512 token rows per chunk (MXU-friendly M, amortizes
    # the per-(chunk,layer) weight DMA), but keep >= min_chunks chunks so the
    # 'parallel' axis can shard across TensorCores (v7x has 2 TCs / chip).
    if block_batch is None:
        block_batch = max(1, min(B, 512 // max(S, 1)))
        if B >= min_chunks > 1:
            block_batch = min(block_batch, max(1, B // min_chunks))
    Bt = int(block_batch)
    num_chunks = (B + Bt - 1) // Bt
    B_pad = num_chunks * Bt
    if B_pad != B:
        # Pad the batch instead of degrading Bt (keeps the matmul M dimension healthy).
        x = jnp.pad(x, ((0, B_pad - B), (0, 0), (0, 0)))

    weights = [params[name] for name in _WEIGHT_ORDER]
    kernel = _make_stack_kernel(E, heads, S, Bt, FF)

    def weight_spec(w):
        # Leading depth dim indexed by the depth grid axis and squeezed away.
        return pl.BlockSpec((None,) + w.shape[1:], lambda bi, d: (d, 0, 0))

    T = Bt * S

    # Explicit VMEM budget: double-buffered per-layer weights + x/y blocks + scratches.
    wl_bytes = sum(math.prod(w.shape[1:]) * w.dtype.itemsize for w in weights)
    act_bytes = 4 * T * E * 4 + (T * 3 * E + T * E + T * FF) * 2
    vmem_limit = int(min(100 * 1024 * 1024,
                         max(32 * 1024 * 1024, 1.3 * (2 * wl_bytes + act_bytes))))

    flops = 2 * depth * B_pad * S * (4 * E * E + 2 * E * FF + 2 * S * E)
    transcendentals = depth * B_pad * S * (heads * S + 4)
    # Weights are streamed once per (batch chunk x layer): include the re-fetch factor.
    bytes_accessed = (num_chunks * sum(int(w.size) * w.dtype.itemsize for w in weights)
                      + 2 * B_pad * S * E * x.dtype.itemsize)
    cost = pl.CostEstimate(flops=int(flops),
                           transcendentals=int(transcendentals),
                           bytes_accessed=int(bytes_accessed))

    y = pl.pallas_call(
        kernel,
        out_shape=jax.ShapeDtypeStruct((B_pad, S, E), x.dtype),
        grid=(num_chunks, depth),
        in_specs=[pl.BlockSpec((Bt, S, E), lambda bi, d: (bi, 0, 0))]
                 + [weight_spec(w) for w in weights],
        out_specs=pl.BlockSpec((Bt, S, E), lambda bi, d: (bi, 0, 0)),
        scratch_shapes=[pltpu.VMEM((Bt, S, 3 * E), jnp.bfloat16),   # qkv
                        pltpu.VMEM((Bt, S, E), jnp.bfloat16),       # per-head PV
                        pltpu.VMEM((T, FF), jnp.bfloat16)],         # ReLU intermediate
        compiler_params=pltpu.CompilerParams(
            dimension_semantics=("parallel", "arbitrary"),
            vmem_limit_bytes=vmem_limit),
        cost_estimate=cost,
    )(x, *weights)

    return y[:B] if B_pad != B else y


# --------------------- pure-JAX reference (same math, bf16 matmul operands) ---------------------
def reference(x, params, H):
    depth = params["in_w"].shape[0]
    B, S, E = x.shape
    Dh = E // H
    scale = 1.0 / math.sqrt(Dh)

    def ln(v, w, b):
        mu = jnp.mean(v, axis=-1, keepdims=True)
        var = jnp.mean((v - mu) ** 2, axis=-1, keepdims=True)
        return (v - mu) / jnp.sqrt(var + LN_EPS) * w + b

    def bdot(a, w):
        return jnp.dot(a.astype(jnp.bfloat16), w.astype(jnp.bfloat16),
                       preferred_element_type=jnp.float32)

    for d in range(depth):
        p = {k: v[d] for k, v in params.items()}
        h = ln(x, p["ln1_w"], p["ln1_b"])
        qkv = bdot(h, p["in_w"]) + p["in_b"]
        q, k, v = qkv[..., :E] * scale, qkv[..., E:2 * E], qkv[..., 2 * E:]
        q = q.reshape(B, S, H, Dh).transpose(0, 2, 1, 3)
        k = k.reshape(B, S, H, Dh).transpose(0, 2, 1, 3)
        v = v.reshape(B, S, H, Dh).transpose(0, 2, 1, 3)
        s = jnp.einsum('bhqd,bhkd->bhqk', q.astype(jnp.bfloat16), k.astype(jnp.bfloat16),
                       preferred_element_type=jnp.float32)
        pa = jax.nn.softmax(s, axis=-1)
        o = jnp.einsum('bhqk,bhkd->bhqd', pa.astype(jnp.bfloat16), v.astype(jnp.bfloat16),
                       preferred_element_type=jnp.float32)
        o = o.transpose(0, 2, 1, 3).reshape(B, S, E)
        x = x + bdot(o, p["out_w"]) + p["out_b"]
        h2 = ln(x, p["ln2_w"], p["ln2_b"])
        ff = jnp.maximum(bdot(h2, p["ff1_w"]) + p["ff1_b"], 0.0)
        x = x + bdot(ff, p["ff2_w"]) + p["ff2_b"]
    return x


# --------------------- deterministic parameter init (depth-stacked, bf16 matmul weights) ---------------------
def init_params(key, depth, E, FF):
    s = 0.02
    keys = jax.random.split(key, 12)

    def rnd(k, shape, dtype=jnp.float32):
        return (jax.random.normal(k, shape, jnp.float32) * s).astype(dtype)

    return dict(
        in_w=rnd(keys[0], (depth, E, 3 * E), jnp.bfloat16),
        in_b=rnd(keys[1], (depth, 1, 3 * E)),
        out_w=rnd(keys[2], (depth, E, E), jnp.bfloat16),
        out_b=rnd(keys[3], (depth, 1, E)),
        ln1_w=jnp.ones((depth, 1, E), jnp.float32) + rnd(keys[4], (depth, 1, E)),
        ln1_b=rnd(keys[5], (depth, 1, E)),
        ln2_w=jnp.ones((depth, 1, E), jnp.float32) + rnd(keys[6], (depth, 1, E)),
        ln2_b=rnd(keys[7], (depth, 1, E)),
        ff1_w=rnd(keys[8], (depth, E, FF), jnp.bfloat16),
        ff1_b=rnd(keys[9], (depth, 1, FF)),
        ff2_w=rnd(keys[10], (depth, FF, E), jnp.bfloat16),
        ff2_b=rnd(keys[11], (depth, 1, E)),
    )


if __name__ == "__main__":
    # Module defaults: emb_size=128, depth=2, heads=4, mlp_ratio=4.
    B, S = 2, 8
    E, H, DEPTH = 128, 4, 2
    FF = 4 * E

    key = jax.random.PRNGKey(0)
    kx, kp = jax.random.split(key)
    x = jax.random.normal(kx, (B, S, E), jnp.float32)
    params = init_params(kp, DEPTH, E, FF)

    y = transformer_encoder(x, params, H)
    y = jax.block_until_ready(y)

    y_ref = reference(x, params, H)
    err = float(jnp.max(jnp.abs(y - y_ref)))
    assert err < 2e-2, f"mismatch vs reference: {err}"

    print("KERNEL_OK")
</pallas_src>

<mosaic_0001>
module attributes {stable_mosaic.version = 11 : i64} {
  func.func @kernel(%arg0: i32, %arg1: i32, %arg2: memref<1x8x128xf32, #tpu.memory_space<vmem>>, %arg3: memref<1x128x384xbf16, #tpu.memory_space<vmem>>, %arg4: memref<1x1x384xf32, #tpu.memory_space<vmem>>, %arg5: memref<1x128x128xbf16, #tpu.memory_space<vmem>>, %arg6: memref<1x1x128xf32, #tpu.memory_space<vmem>>, %arg7: memref<1x1x128xf32, #tpu.memory_space<vmem>>, %arg8: memref<1x1x128xf32, #tpu.memory_space<vmem>>, %arg9: memref<1x1x128xf32, #tpu.memory_space<vmem>>, %arg10: memref<1x1x128xf32, #tpu.memory_space<vmem>>, %arg11: memref<1x128x512xbf16, #tpu.memory_space<vmem>>, %arg12: memref<1x1x512xf32, #tpu.memory_space<vmem>>, %arg13: memref<1x512x128xbf16, #tpu.memory_space<vmem>>, %arg14: memref<1x1x128xf32, #tpu.memory_space<vmem>>, %arg15: memref<1x8x128xf32, #tpu.memory_space<vmem>>, %arg16: memref<1x8x384xbf16, #tpu.memory_space<vmem>>, %arg17: memref<1x8x128xbf16, #tpu.memory_space<vmem>>, %arg18: memref<8x512xbf16, #tpu.memory_space<vmem>>) attributes {dimension_semantics = [#tpu.dimension_semantics<parallel>, #tpu.dimension_semantics<arbitrary>], iteration_bounds = array<i64: 2, 2>, scalar_prefetch = 0 : i64, scratch_operands = 3 : i64, tpu.core_type = #tpu.core_type<tc>, window_params = [{transform_indices = @transform_0, window_bounds = array<i64: 1, 8, 128>}, {transform_indices = @transform_1, window_bounds = array<i64: 1, 128, 384>}, {transform_indices = @transform_2, window_bounds = array<i64: 1, 1, 384>}, {transform_indices = @transform_3, window_bounds = array<i64: 1, 128, 128>}, {transform_indices = @transform_4, window_bounds = array<i64: 1, 1, 128>}, {transform_indices = @transform_5, window_bounds = array<i64: 1, 1, 128>}, {transform_indices = @transform_6, window_bounds = array<i64: 1, 1, 128>}, {transform_indices = @transform_7, window_bounds = array<i64: 1, 1, 128>}, {transform_indices = @transform_8, window_bounds = array<i64: 1, 1, 128>}, {transform_indices = @transform_9, window_bounds = array<i64: 1, 128, 512>}, {transform_indices = @transform_10, window_bounds = array<i64: 1, 1, 512>}, {transform_indices = @transform_11, window_bounds = array<i64: 1, 512, 128>}, {transform_indices = @transform_12, window_bounds = array<i64: 1, 1, 128>}, {transform_indices = @transform_13, window_bounds = array<i64: 1, 8, 128>}]} {
    %c0_i32 = arith.constant 0 : i32
    %0 = arith.cmpi eq, %arg1, %c0_i32 : i32
    %1 = arith.extui %0 : i1 to i32
    %c0_i32_0 = arith.constant 0 : i32
    %2 = arith.cmpi ne, %1, %c0_i32_0 : i32
    scf.if %2 {
      %c0_119 = arith.constant 0 : index
      %c0_120 = arith.constant 0 : index
      %c0_121 = arith.constant 0 : index
      %169 = vector.load %arg2[%c0_119, %c0_120, %c0_121] : memref<1x8x128xf32, #tpu.memory_space<vmem>>, vector<1x8x128xf32>
      %c0_122 = arith.constant 0 : index
      %c0_123 = arith.constant 0 : index
      %c0_124 = arith.constant 0 : index
      %170 = vector.load %arg15[%c0_122, %c0_123, %c0_124] : memref<1x8x128xf32, #tpu.memory_space<vmem>>, vector<1x8x128xf32>
      tpu.vector_store %arg15[%c0_122, %c0_123, %c0_124], %169 {strides = array<i32>} : memref<1x8x128xf32, #tpu.memory_space<vmem>>, vector<1x8x128xf32>,
    } else {
    }
    %c0 = arith.constant 0 : index
    %c0_1 = arith.constant 0 : index
    %c0_2 = arith.constant 0 : index
    %3 = vector.load %arg15[%c0, %c0_1, %c0_2] : memref<1x8x128xf32, #tpu.memory_space<vmem>>, vector<1x8x128xf32>
    %4 = vector.shape_cast %3 : vector<1x8x128xf32> to vector<8x128xf32>
    %c0_3 = arith.constant 0 : index
    %c0_4 = arith.constant 0 : index
    %c0_5 = arith.constant 0 : index
    %5 = vector.load %arg7[%c0_3, %c0_4, %c0_5] : memref<1x1x128xf32, #tpu.memory_space<vmem>>, vector<1x1x128xf32>
    %6 = vector.shape_cast %5 : vector<1x1x128xf32> to vector<1x128xf32>
    %c0_6 = arith.constant 0 : index
    %c0_7 = arith.constant 0 : index
    %c0_8 = arith.constant 0 : index
    %7 = vector.load %arg8[%c0_6, %c0_7, %c0_8] : memref<1x1x128xf32, #tpu.memory_space<vmem>>, vector<1x1x128xf32>
    %8 = vector.shape_cast %7 : vector<1x1x128xf32> to vector<1x128xf32>
    %cst = arith.constant dense<0.000000e+00> : vector<8xf32>
    %9 = vector.multi_reduction <add>, %4, %cst [1] : vector<8x128xf32> to vector<8xf32>
    %10 = vector.shape_cast %9 : vector<8xf32> to vector<8x1xf32>
    %cst_9 = arith.constant 1.280000e+02 : f32
    %11 = vector.broadcast %cst_9 : f32 to vector<8x1xf32>
    %12 = arith.divf %10, %11 : vector<8x1xf32>
    %13 = vector.broadcast %12 : vector<8x1xf32> to vector<8x128xf32>
    %14 = arith.subf %4, %13 : vector<8x128xf32>
    %15 = arith.mulf %14, %14 : vector<8x128xf32>
    %cst_10 = arith.constant dense<0.000000e+00> : vector<8xf32>
    %16 = vector.multi_reduction <add>, %15, %cst_10 [1] : vector<8x128xf32> to vector<8xf32>
    %17 = vector.shape_cast %16 : vector<8xf32> to vector<8x1xf32>
    %cst_11 = arith.constant 1.280000e+02 : f32
    %18 = vector.broadcast %cst_11 : f32 to vector<8x1xf32>
    %19 = arith.divf %17, %18 : vector<8x1xf32>
    %cst_12 = arith.constant 9.99999974E-6 : f32
    %20 = vector.broadcast %cst_12 : f32 to vector<8x1xf32>
    %21 = arith.addf %19, %20 : vector<8x1xf32>
    %22 = math.rsqrt %21 : vector<8x1xf32>
    %23 = vector.broadcast %22 : vector<8x1xf32> to vector<8x128xf32>
    %24 = arith.mulf %14, %23 : vector<8x128xf32>
    %25 = vector.broadcast %6 : vector<1x128xf32> to vector<8x128xf32>
    %26 = arith.mulf %24, %25 : vector<8x128xf32>
    %27 = vector.broadcast %8 : vector<1x128xf32> to vector<8x128xf32>
    %28 = arith.addf %26, %27 : vector<8x128xf32>
    %29 = arith.truncf %28 : vector<8x128xf32> to vector<8x128xbf16>
    %c0_13 = arith.constant 0 : index
    %c0_14 = arith.constant 0 : index
    %c0_15 = arith.constant 0 : index
    %30 = vector.load %arg3[%c0_13, %c0_14, %c0_15] : memref<1x128x384xbf16, #tpu.memory_space<vmem>>, vector<1x128x384xbf16>
    %31 = vector.shape_cast %30 : vector<1x128x384xbf16> to vector<128x384xbf16>
    %cst_16 = arith.constant dense<0.000000e+00> : vector<8x384xf32>
    %32 = tpu.matmul %29, %31, %cst_16 {dimension_numbers = #tpu.dot_dimension_numbers<[1], [0], [0], [1], [0, 0, 1, 1], [], []>} : vector<8x128xbf16>, vector<128x384xbf16>, vector<8x384xf32> -> vector<8x384xf32>
    %c0_17 = arith.constant 0 : index
    %c0_18 = arith.constant 0 : index
    %c0_19 = arith.constant 0 : index
    %33 = vector.load %arg4[%c0_17, %c0_18, %c0_19] : memref<1x1x384xf32, #tpu.memory_space<vmem>>, vector<1x1x384xf32>
    %34 = vector.shape_cast %33 : vector<1x1x384xf32> to vector<1x384xf32>
    %35 = vector.broadcast %34 : vector<1x384xf32> to vector<8x384xf32>
    %36 = arith.addf %32, %35 : vector<8x384xf32>
    %37 = vector.shape_cast %36 : vector<8x384xf32> to vector<1x8x384xf32>
    %38 = arith.truncf %37 : vector<1x8x384xf32> to vector<1x8x384xbf16>
    %c0_20 = arith.constant 0 : index
    %c0_21 = arith.constant 0 : index
    %c0_22 = arith.constant 0 : index
    %39 = vector.load %arg16[%c0_20, %c0_21, %c0_22] : memref<1x8x384xbf16, #tpu.memory_space<vmem>>, vector<1x8x384xbf16>
    tpu.vector_store %arg16[%c0_20, %c0_21, %c0_22], %38 {strides = array<i32>} : memref<1x8x384xbf16, #tpu.memory_space<vmem>>, vector<1x8x384xbf16>,
    %c0_23 = arith.constant 0 : index
    %c0_24 = arith.constant 0 : index
    %c0_25 = arith.constant 0 : index
    %40 = vector.load %arg16[%c0_23, %c0_24, %c0_25] : memref<1x8x384xbf16, #tpu.memory_space<vmem>>, vector<1x8x32xbf16>
    %c0_26 = arith.constant 0 : index
    %c0_27 = arith.constant 0 : index
    %c128 = arith.constant 128 : index
    %41 = vector.load %arg16[%c0_26, %c0_27, %c128] : memref<1x8x384xbf16, #tpu.memory_space<vmem>>, vector<1x8x32xbf16>
    %c0_28 = arith.constant 0 : index
    %c0_29 = arith.constant 0 : index
    %c256 = arith.constant 256 : index
    %42 = vector.load %arg16[%c0_28, %c0_29, %c256] : memref<1x8x384xbf16, #tpu.memory_space<vmem>>, vector<1x8x32xbf16>
    "tpu.trace_start"() <{level = 10 : i32, message = "bqd,bkd->bqk"}> : () -> ()
    %cst_30 = arith.constant dense<0.000000e+00> : vector<1x8x8xf32>
    %43 = tpu.matmul %40, %41, %cst_30 {dimension_numbers = #tpu.dot_dimension_numbers<[2], [2], [1], [1], [0, 0, 0, 1, 1, 1], [0], [0]>} : vector<1x8x32xbf16>, vector<1x8x32xbf16>, vector<1x8x8xf32> -> vector<1x8x8xf32>
    "tpu.trace_stop"() : () -> ()
    %cst_31 = arith.constant dense<0xFF800000> : vector<1x8xf32>
    %44 = vector.multi_reduction <maximumf>, %43, %cst_31 [2] : vector<1x8x8xf32> to vector<1x8xf32>
    %45 = vector.shape_cast %44 : vector<1x8xf32> to vector<1x8x1xf32>
    %46 = vector.broadcast %45 : vector<1x8x1xf32> to vector<1x8x8xf32>
    %47 = arith.subf %43, %46 : vector<1x8x8xf32>
    %48 = math.exp %47 : vector<1x8x8xf32>
    %cst_32 = arith.constant dense<0.000000e+00> : vector<1x8xf32>
    %49 = vector.multi_reduction <add>, %48, %cst_32 [2] : vector<1x8x8xf32> to vector<1x8xf32>
    %50 = vector.shape_cast %49 : vector<1x8xf32> to vector<1x8x1xf32>
    %51 = tpu.reciprocal %50 {approx = true} : vector<1x8x1xf32> -> vector<1x8x1xf32>
    %52 = vector.broadcast %51 : vector<1x8x1xf32> to vector<1x8x8xf32>
    %53 = arith.mulf %48, %52 : vector<1x8x8xf32>
    %54 = arith.truncf %53 : vector<1x8x8xf32> to vector<1x8x8xbf16>
    "tpu.trace_start"() <{level = 10 : i32, message = "bqk,bkd->bqd"}> : () -> ()
    %cst_33 = arith.constant dense<0.000000e+00> : vector<1x8x32xf32>
    %55 = tpu.matmul %54, %42, %cst_33 {dimension_numbers = #tpu.dot_dimension_numbers<[2], [1], [1], [2], [0, 0, 0, 1, 1, 2], [0], [0]>} : vector<1x8x8xbf16>, vector<1x8x32xbf16>, vector<1x8x32xf32> -> vector<1x8x32xf32>
    "tpu.trace_stop"() : () -> ()
    %56 = arith.truncf %55 : vector<1x8x32xf32> to vector<1x8x32xbf16>
    %c0_34 = arith.constant 0 : index
    %c0_35 = arith.constant 0 : index
    %c0_36 = arith.constant 0 : index
    %57 = vector.load %arg17[%c0_34, %c0_35, %c0_36] : memref<1x8x128xbf16, #tpu.memory_space<vmem>>, vector<1x8x32xbf16>
    tpu.vector_store %arg17[%c0_34, %c0_35, %c0_36], %56 {strides = array<i32>} : memref<1x8x128xbf16, #tpu.memory_space<vmem>>, vector<1x8x32xbf16>,
    %c0_37 = arith.constant 0 : index
    %c0_38 = arith.constant 0 : index
    %c32 = arith.constant 32 : index
    %58 = vector.load %arg16[%c0_37, %c0_38, %c32] : memref<1x8x384xbf16, #tpu.memory_space<vmem>>, vector<1x8x32xbf16>
    %c0_39 = arith.constant 0 : index
    %c0_40 = arith.constant 0 : index
    %c160 = arith.constant 160 : index
    %59 = vector.load %arg16[%c0_39, %c0_40, %c160] : memref<1x8x384xbf16, #tpu.memory_space<vmem>>, vector<1x8x32xbf16>
    %c0_41 = arith.constant 0 : index
    %c0_42 = arith.constant 0 : index
    %c288 = arith.constant 288 : index
    %60 = vector.load %arg16[%c0_41, %c0_42, %c288] : memref<1x8x384xbf16, #tpu.memory_space<vmem>>, vector<1x8x32xbf16>
    "tpu.trace_start"() <{level = 10 : i32, message = "bqd,bkd->bqk"}> : () -> ()
    %cst_43 = arith.constant dense<0.000000e+00> : vector<1x8x8xf32>
    %61 = tpu.matmul %58, %59, %cst_43 {dimension_numbers = #tpu.dot_dimension_numbers<[2], [2], [1], [1], [0, 0, 0, 1, 1, 1], [0], [0]>} : vector<1x8x32xbf16>, vector<1x8x32xbf16>, vector<1x8x8xf32> -> vector<1x8x8xf32>
    "tpu.trace_stop"() : () -> ()
    %cst_44 = arith.constant dense<0xFF800000> : vector<1x8xf32>
    %62 = vector.multi_reduction <maximumf>, %61, %cst_44 [2] : vector<1x8x8xf32> to vector<1x8xf32>
    %63 = vector.shape_cast %62 : vector<1x8xf32> to vector<1x8x1xf32>
    %64 = vector.broadcast %63 : vector<1x8x1xf32> to vector<1x8x8xf32>
    %65 = arith.subf %61, %64 : vector<1x8x8xf32>
    %66 = math.exp %65 : vector<1x8x8xf32>
    %cst_45 = arith.constant dense<0.000000e+00> : vector<1x8xf32>
    %67 = vector.multi_reduction <add>, %66, %cst_45 [2] : vector<1x8x8xf32> to vector<1x8xf32>
    %68 = vector.shape_cast %67 : vector<1x8xf32> to vector<1x8x1xf32>
    %69 = tpu.reciprocal %68 {approx = true} : vector<1x8x1xf32> -> vector<1x8x1xf32>
    %70 = vector.broadcast %69 : vector<1x8x1xf32> to vector<1x8x8xf32>
    %71 = arith.mulf %66, %70 : vector<1x8x8xf32>
    %72 = arith.truncf %71 : vector<1x8x8xf32> to vector<1x8x8xbf16>
    "tpu.trace_start"() <{level = 10 : i32, message = "bqk,bkd->bqd"}> : () -> ()
    %cst_46 = arith.constant dense<0.000000e+00> : vector<1x8x32xf32>
    %73 = tpu.matmul %72, %60, %cst_46 {dimension_numbers = #tpu.dot_dimension_numbers<[2], [1], [1], [2], [0, 0, 0, 1, 1, 2], [0], [0]>} : vector<1x8x8xbf16>, vector<1x8x32xbf16>, vector<1x8x32xf32> -> vector<1x8x32xf32>
    "tpu.trace_stop"() : () -> ()
    %74 = arith.truncf %73 : vector<1x8x32xf32> to vector<1x8x32xbf16>
    %c0_47 = arith.constant 0 : index
    %c0_48 = arith.constant 0 : index
    %c32_49 = arith.constant 32 : index
    %75 = vector.load %arg17[%c0_47, %c0_48, %c32_49] : memref<1x8x128xbf16, #tpu.memory_space<vmem>>, vector<1x8x32xbf16>
    tpu.vector_store %arg17[%c0_47, %c0_48, %c32_49], %74 {strides = array<i32>} : memref<1x8x128xbf16, #tpu.memory_space<vmem>>, vector<1x8x32xbf16>,
    %c0_50 = arith.constant 0 : index
    %c0_51 = arith.constant 0 : index
    %c64 = arith.constant 64 : index
    %76 = vector.load %arg16[%c0_50, %c0_51, %c64] : memref<1x8x384xbf16, #tpu.memory_space<vmem>>, vector<1x8x32xbf16>
    %c0_52 = arith.constant 0 : index
    %c0_53 = arith.constant 0 : index
    %c192 = arith.constant 192 : index
    %77 = vector.load %arg16[%c0_52, %c0_53, %c192] : memref<1x8x384xbf16, #tpu.memory_space<vmem>>, vector<1x8x32xbf16>
    %c0_54 = arith.constant 0 : index
    %c0_55 = arith.constant 0 : index
    %c320 = arith.constant 320 : index
    %78 = vector.load %arg16[%c0_54, %c0_55, %c320] : memref<1x8x384xbf16, #tpu.memory_space<vmem>>, vector<1x8x32xbf16>
    "tpu.trace_start"() <{level = 10 : i32, message = "bqd,bkd->bqk"}> : () -> ()
    %cst_56 = arith.constant dense<0.000000e+00> : vector<1x8x8xf32>
    %79 = tpu.matmul %76, %77, %cst_56 {dimension_numbers = #tpu.dot_dimension_numbers<[2], [2], [1], [1], [0, 0, 0, 1, 1, 1], [0], [0]>} : vector<1x8x32xbf16>, vector<1x8x32xbf16>, vector<1x8x8xf32> -> vector<1x8x8xf32>
    "tpu.trace_stop"() : () -> ()
    %cst_57 = arith.constant dense<0xFF800000> : vector<1x8xf32>
    %80 = vector.multi_reduction <maximumf>, %79, %cst_57 [2] : vector<1x8x8xf32> to vector<1x8xf32>
    %81 = vector.shape_cast %80 : vector<1x8xf32> to vector<1x8x1xf32>
    %82 = vector.broadcast %81 : vector<1x8x1xf32> to vector<1x8x8xf32>
    %83 = arith.subf %79, %82 : vector<1x8x8xf32>
    %84 = math.exp %83 : vector<1x8x8xf32>
    %cst_58 = arith.constant dense<0.000000e+00> : vector<1x8xf32>
    %85 = vector.multi_reduction <add>, %84, %cst_58 [2] : vector<1x8x8xf32> to vector<1x8xf32>
    %86 = vector.shape_cast %85 : vector<1x8xf32> to vector<1x8x1xf32>
    %87 = tpu.reciprocal %86 {approx = true} : vector<1x8x1xf32> -> vector<1x8x1xf32>
    %88 = vector.broadcast %87 : vector<1x8x1xf32> to vector<1x8x8xf32>
    %89 = arith.mulf %84, %88 : vector<1x8x8xf32>
    %90 = arith.truncf %89 : vector<1x8x8xf32> to vector<1x8x8xbf16>
    "tpu.trace_start"() <{level = 10 : i32, message = "bqk,bkd->bqd"}> : () -> ()
    %cst_59 = arith.constant dense<0.000000e+00> : vector<1x8x32xf32>
    %91 = tpu.matmul %90, %78, %cst_59 {dimension_numbers = #tpu.dot_dimension_numbers<[2], [1], [1], [2], [0, 0, 0, 1, 1, 2], [0], [0]>} : vector<1x8x8xbf16>, vector<1x8x32xbf16>, vector<1x8x32xf32> -> vector<1x8x32xf32>
    "tpu.trace_stop"() : () -> ()
    %92 = arith.truncf %91 : vector<1x8x32xf32> to vector<1x8x32xbf16>
    %c0_60 = arith.constant 0 : index
    %c0_61 = arith.constant 0 : index
    %c64_62 = arith.constant 64 : index
    %93 = vector.load %arg17[%c0_60, %c0_61, %c64_62] : memref<1x8x128xbf16, #tpu.memory_space<vmem>>, vector<1x8x32xbf16>
    tpu.vector_store %arg17[%c0_60, %c0_61, %c64_62], %92 {strides = array<i32>} : memref<1x8x128xbf16, #tpu.memory_space<vmem>>, vector<1x8x32xbf16>,
    %c0_63 = arith.constant 0 : index
    %c0_64 = arith.constant 0 : index
    %c96 = arith.constant 96 : index
    %94 = vector.load %arg16[%c0_63, %c0_64, %c96] : memref<1x8x384xbf16, #tpu.memory_space<vmem>>, vector<1x8x32xbf16>
    %c0_65 = arith.constant 0 : index
    %c0_66 = arith.constant 0 : index
    %c224 = arith.constant 224 : index
    %95 = vector.load %arg16[%c0_65, %c0_66, %c224] : memref<1x8x384xbf16, #tpu.memory_space<vmem>>, vector<1x8x32xbf16>
    %c0_67 = arith.constant 0 : index
    %c0_68 = arith.constant 0 : index
    %c352 = arith.constant 352 : index
    %96 = vector.load %arg16[%c0_67, %c0_68, %c352] : memref<1x8x384xbf16, #tpu.memory_space<vmem>>, vector<1x8x32xbf16>
    "tpu.trace_start"() <{level = 10 : i32, message = "bqd,bkd->bqk"}> : () -> ()
    %cst_69 = arith.constant dense<0.000000e+00> : vector<1x8x8xf32>
    %97 = tpu.matmul %94, %95, %cst_69 {dimension_numbers = #tpu.dot_dimension_numbers<[2], [2], [1], [1], [0, 0, 0, 1, 1, 1], [0], [0]>} : vector<1x8x32xbf16>, vector<1x8x32xbf16>, vector<1x8x8xf32> -> vector<1x8x8xf32>
    "tpu.trace_stop"() : () -> ()
    %cst_70 = arith.constant dense<0xFF800000> : vector<1x8xf32>
    %98 = vector.multi_reduction <maximumf>, %97, %cst_70 [2] : vector<1x8x8xf32> to vector<1x8xf32>
    %99 = vector.shape_cast %98 : vector<1x8xf32> to vector<1x8x1xf32>
    %100 = vector.broadcast %99 : vector<1x8x1xf32> to vector<1x8x8xf32>
    %101 = arith.subf %97, %100 : vector<1x8x8xf32>
    %102 = math.exp %101 : vector<1x8x8xf32>
    %cst_71 = arith.constant dense<0.000000e+00> : vector<1x8xf32>
    %103 = vector.multi_reduction <add>, %102, %cst_71 [2] : vector<1x8x8xf32> to vector<1x8xf32>
    %104 = vector.shape_cast %103 : vector<1x8xf32> to vector<1x8x1xf32>
    %105 = tpu.reciprocal %104 {approx = true} : vector<1x8x1xf32> -> vector<1x8x1xf32>
    %106 = vector.broadcast %105 : vector<1x8x1xf32> to vector<1x8x8xf32>
    %107 = arith.mulf %102, %106 : vector<1x8x8xf32>
    %108 = arith.truncf %107 : vector<1x8x8xf32> to vector<1x8x8xbf16>
    "tpu.trace_start"() <{level = 10 : i32, message = "bqk,bkd->bqd"}> : () -> ()
    %cst_72 = arith.constant dense<0.000000e+00> : vector<1x8x32xf32>
    %109 = tpu.matmul %108, %96, %cst_72 {dimension_numbers = #tpu.dot_dimension_numbers<[2], [1], [1], [2], [0, 0, 0, 1, 1, 2], [0], [0]>} : vector<1x8x8xbf16>, vector<1x8x32xbf16>, vector<1x8x32xf32> -> vector<1x8x32xf32>
    "tpu.trace_stop"() : () -> ()
    %110 = arith.truncf %109 : vector<1x8x32xf32> to vector<1x8x32xbf16>
    %c0_73 = arith.constant 0 : index
    %c0_74 = arith.constant 0 : index
    %c96_75 = arith.constant 96 : index
    %111 = vector.load %arg17[%c0_73, %c0_74, %c96_75] : memref<1x8x128xbf16, #tpu.memory_space<vmem>>, vector<1x8x32xbf16>
    tpu.vector_store %arg17[%c0_73, %c0_74, %c96_75], %110 {strides = array<i32>} : memref<1x8x128xbf16, #tpu.memory_space<vmem>>, vector<1x8x32xbf16>,
    %c0_76 = arith.constant 0 : index
    %c0_77 = arith.constant 0 : index
    %c0_78 = arith.constant 0 : index
    %112 = vector.load %arg17[%c0_76, %c0_77, %c0_78] : memref<1x8x128xbf16, #tpu.memory_space<vmem>>, vector<1x8x128xbf16>
    %113 = vector.shape_cast %112 : vector<1x8x128xbf16> to vector<8x128xbf16>
    %c0_79 = arith.constant 0 : index
    %c0_80 = arith.constant 0 : index
    %c0_81 = arith.constant 0 : index
    %114 = vector.load %arg5[%c0_79, %c0_80, %c0_81] : memref<1x128x128xbf16, #tpu.memory_space<vmem>>, vector<1x128x128xbf16>
    %115 = vector.shape_cast %114 : vector<1x128x128xbf16> to vector<128x128xbf16>
    %cst_82 = arith.constant dense<0.000000e+00> : vector<8x128xf32>
    %116 = tpu.matmul %113, %115, %cst_82 {dimension_numbers = #tpu.dot_dimension_numbers<[1], [0], [0], [1], [0, 0, 1, 1], [], []>} : vector<8x128xbf16>, vector<128x128xbf16>, vector<8x128xf32> -> vector<8x128xf32>
    %c0_83 = arith.constant 0 : index
    %c0_84 = arith.constant 0 : index
    %c0_85 = arith.constant 0 : index
    %117 = vector.load %arg6[%c0_83, %c0_84, %c0_85] : memref<1x1x128xf32, #tpu.memory_space<vmem>>, vector<1x1x128xf32>
    %118 = vector.shape_cast %117 : vector<1x1x128xf32> to vector<1x128xf32>
    %119 = vector.broadcast %118 : vector<1x128xf32> to vector<8x128xf32>
    %120 = arith.addf %116, %119 : vector<8x128xf32>
    %121 = arith.addf %4, %120 : vector<8x128xf32>
    %c0_86 = arith.constant 0 : index
    %c0_87 = arith.constant 0 : index
    %c0_88 = arith.constant 0 : index
    %122 = vector.load %arg9[%c0_86, %c0_87, %c0_88] : memref<1x1x128xf32, #tpu.memory_space<vmem>>, vector<1x1x128xf32>
    %123 = vector.shape_cast %122 : vector<1x1x128xf32> to vector<1x128xf32>
    %c0_89 = arith.constant 0 : index
    %c0_90 = arith.constant 0 : index
    %c0_91 = arith.constant 0 : index
    %124 = vector.load %arg10[%c0_89, %c0_90, %c0_91] : memref<1x1x128xf32, #tpu.memory_space<vmem>>, vector<1x1x128xf32>
    %125 = vector.shape_cast %124 : vector<1x1x128xf32> to vector<1x128xf32>
    %cst_92 = arith.constant dense<0.000000e+00> : vector<8xf32>
    %126 = vector.multi_reduction <add>, %121, %cst_92 [1] : vector<8x128xf32> to vector<8xf32>
    %127 = vector.shape_cast %126 : vector<8xf32> to vector<8x1xf32>
    %cst_93 = arith.constant 1.280000e+02 : f32
    %128 = vector.broadcast %cst_93 : f32 to vector<8x1xf32>
    %129 = arith.divf %127, %128 : vector<8x1xf32>
    %130 = vector.broadcast %129 : vector<8x1xf32> to vector<8x128xf32>
    %131 = arith.subf %121, %130 : vector<8x128xf32>
    %132 = arith.mulf %131, %131 : vector<8x128xf32>
    %cst_94 = arith.constant dense<0.000000e+00> : vector<8xf32>
    %133 = vector.multi_reduction <add>, %132, %cst_94 [1] : vector<8x128xf32> to vector<8xf32>
    %134 = vector.shape_cast %133 : vector<8xf32> to vector<8x1xf32>
    %cst_95 = arith.constant 1.280000e+02 : f32
    %135 = vector.broadcast %cst_95 : f32 to vector<8x1xf32>
    %136 = arith.divf %134, %135 : vector<8x1xf32>
    %cst_96 = arith.constant 9.99999974E-6 : f32
    %137 = vector.broadcast %cst_96 : f32 to vector<8x1xf32>
    %138 = arith.addf %136, %137 : vector<8x1xf32>
    %139 = math.rsqrt %138 : vector<8x1xf32>
    %140 = vector.broadcast %139 : vector<8x1xf32> to vector<8x128xf32>
    %141 = arith.mulf %131, %140 : vector<8x128xf32>
    %142 = vector.broadcast %123 : vector<1x128xf32> to vector<8x128xf32>
    %143 = arith.mulf %141, %142 : vector<8x128xf32>
    %144 = vector.broadcast %125 : vector<1x128xf32> to vector<8x128xf32>
    %145 = arith.addf %143, %144 : vector<8x128xf32>
    %146 = arith.truncf %145 : vector<8x128xf32> to vector<8x128xbf16>
    %c0_97 = arith.constant 0 : index
    %c0_98 = arith.constant 0 : index
    %c0_99 = arith.constant 0 : index
    %147 = vector.load %arg11[%c0_97, %c0_98, %c0_99] : memref<1x128x512xbf16, #tpu.memory_space<vmem>>, vector<1x128x512xbf16>
    %148 = vector.shape_cast %147 : vector<1x128x512xbf16> to vector<128x512xbf16>
    %cst_100 = arith.constant dense<0.000000e+00> : vector<8x512xf32>
    %149 = tpu.matmul %146, %148, %cst_100 {dimension_numbers = #tpu.dot_dimension_numbers<[1], [0], [0], [1], [0, 0, 1, 1], [], []>} : vector<8x128xbf16>, vector<128x512xbf16>, vector<8x512xf32> -> vector<8x512xf32>
    %c0_101 = arith.constant 0 : index
    %c0_102 = arith.constant 0 : index
    %c0_103 = arith.constant 0 : index
    %150 = vector.load %arg12[%c0_101, %c0_102, %c0_103] : memref<1x1x512xf32, #tpu.memory_space<vmem>>, vector<1x1x512xf32>
    %151 = vector.shape_cast %150 : vector<1x1x512xf32> to vector<1x512xf32>
    %152 = vector.broadcast %151 : vector<1x512xf32> to vector<8x512xf32>
    %153 = arith.addf %149, %152 : vector<8x512xf32>
    %cst_104 = arith.constant 0.000000e+00 : f32
    %154 = vector.broadcast %cst_104 : f32 to vector<8x512xf32>
    %155 = arith.maximumf %153, %154 : vector<8x512xf32>
    %156 = arith.truncf %155 : vector<8x512xf32> to vector<8x512xbf16>
    %c0_105 = arith.constant 0 : index
    %c0_106 = arith.constant 0 : index
    %157 = vector.load %arg18[%c0_105, %c0_106] : memref<8x512xbf16, #tpu.memory_space<vmem>>, vector<8x512xbf16>
    tpu.vector_store %arg18[%c0_105, %c0_106], %156 {strides = array<i32>} : memref<8x512xbf16, #tpu.memory_space<vmem>>, vector<8x512xbf16>,
    %c0_107 = arith.constant 0 : index
    %c0_108 = arith.constant 0 : index
    %158 = vector.load %arg18[%c0_107, %c0_108] : memref<8x512xbf16, #tpu.memory_space<vmem>>, vector<8x512xbf16>
    %c0_109 = arith.constant 0 : index
    %c0_110 = arith.constant 0 : index
    %c0_111 = arith.constant 0 : index
    %159 = vector.load %arg13[%c0_109, %c0_110, %c0_111] : memref<1x512x128xbf16, #tpu.memory_space<vmem>>, vector<1x512x128xbf16>
    %160 = vector.shape_cast %159 : vector<1x512x128xbf16> to vector<512x128xbf16>
    %cst_112 = arith.constant dense<0.000000e+00> : vector<8x128xf32>
    %161 = tpu.matmul %158, %160, %cst_112 {dimension_numbers = #tpu.dot_dimension_numbers<[1], [0], [0], [1], [0, 0, 1, 1], [], []>} : vector<8x512xbf16>, vector<512x128xbf16>, vector<8x128xf32> -> vector<8x128xf32>
    %c0_113 = arith.constant 0 : index
    %c0_114 = arith.constant 0 : index
    %c0_115 = arith.constant 0 : index
    %162 = vector.load %arg14[%c0_113, %c0_114, %c0_115] : memref<1x1x128xf32, #tpu.memory_space<vmem>>, vector<1x1x128xf32>
    %163 = vector.shape_cast %162 : vector<1x1x128xf32> to vector<1x128xf32>
    %164 = vector.broadcast %163 : vector<1x128xf32> to vector<8x128xf32>
    %165 = arith.addf %161, %164 : vector<8x128xf32>
    %166 = arith.addf %121, %165 : vector<8x128xf32>
    %167 = vector.shape_cast %166 : vector<8x128xf32> to vector<1x8x128xf32>
    %c0_116 = arith.constant 0 : index
    %c0_117 = arith.constant 0 : index
    %c0_118 = arith.constant 0 : index
    %168 = vector.load %arg15[%c0_116, %c0_117, %c0_118] : memref<1x8x128xf32, #tpu.memory_space<vmem>>, vector<1x8x128xf32>
    tpu.vector_store %arg15[%c0_116, %c0_117, %c0_118], %167 {strides = array<i32>} : memref<1x8x128xf32, #tpu.memory_space<vmem>>, vector<1x8x128xf32>,
    return
  }
  func.func @transform_0(%arg0: i32, %arg1: i32) -> (i32, i32, i32) {
    %c0_i32 = arith.constant 0 : i32
    %c0_i32_0 = arith.constant 0 : i32
    %c0_i32_1 = arith.constant 0 : i32
    return %arg0, %c0_i32, %c0_i32_0 : i32, i32, i32
  }
  func.func @transform_1(%arg0: i32, %arg1: i32) -> (i32, i32, i32) {
    %c0_i32 = arith.constant 0 : i32
    %c0_i32_0 = arith.constant 0 : i32
    %c0_i32_1 = arith.constant 0 : i32
    return %arg1, %c0_i32, %c0_i32_0 : i32, i32, i32
  }
  func.func @transform_2(%arg0: i32, %arg1: i32) -> (i32, i32, i32) {
    %c0_i32 = arith.constant 0 : i32
    %c0_i32_0 = arith.constant 0 : i32
    %c0_i32_1 = arith.constant 0 : i32
    return %arg1, %c0_i32, %c0_i32_0 : i32, i32, i32
  }
  func.func @transform_3(%arg0: i32, %arg1: i32) -> (i32, i32, i32) {
    %c0_i32 = arith.constant 0 : i32
    %c0_i32_0 = arith.constant 0 : i32
    %c0_i32_1 = arith.constant 0 : i32
    return %arg1, %c0_i32, %c0_i32_0 : i32, i32, i32
  }
  func.func @transform_4(%arg0: i32, %arg1: i32) -> (i32, i32, i32) {
    %c0_i32 = arith.constant 0 : i32
    %c0_i32_0 = arith.constant 0 : i32
    %c0_i32_1 = arith.constant 0 : i32
    return %arg1, %c0_i32, %c0_i32_0 : i32, i32, i32
  }
  func.func @transform_5(%arg0: i32, %arg1: i32) -> (i32, i32, i32) {
    %c0_i32 = arith.constant 0 : i32
    %c0_i32_0 = arith.constant 0 : i32
    %c0_i32_1 = arith.constant 0 : i32
    return %arg1, %c0_i32, %c0_i32_0 : i32, i32, i32
  }
  func.func @transform_6(%arg0: i32, %arg1: i32) -> (i32, i32, i32) {
    %c0_i32 = arith.constant 0 : i32
    %c0_i32_0 = arith.constant 0 : i32
    %c0_i32_1 = arith.constant 0 : i32
    return %arg1, %c0_i32, %c0_i32_0 : i32, i32, i32
  }
  func.func @transform_7(%arg0: i32, %arg1: i32) -> (i32, i32, i32) {
    %c0_i32 = arith.constant 0 : i32
    %c0_i32_0 = arith.constant 0 : i32
    %c0_i32_1 = arith.constant 0 : i32
    return %arg1, %c0_i32, %c0_i32_0 : i32, i32, i32
  }
  func.func @transform_8(%arg0: i32, %arg1: i32) -> (i32, i32, i32) {
    %c0_i32 = arith.constant 0 : i32
    %c0_i32_0 = arith.constant 0 : i32
    %c0_i32_1 = arith.constant 0 : i32
    return %arg1, %c0_i32, %c0_i32_0 : i32, i32, i32
  }
  func.func @transform_9(%arg0: i32, %arg1: i32) -> (i32, i32, i32) {
    %c0_i32 = arith.constant 0 : i32
    %c0_i32_0 = arith.constant 0 : i32
    %c0_i32_1 = arith.constant 0 : i32
    return %arg1, %c0_i32, %c0_i32_0 : i32, i32, i32
  }
  func.func @transform_10(%arg0: i32, %arg1: i32) -> (i32, i32, i32) {
    %c0_i32 = arith.constant 0 : i32
    %c0_i32_0 = arith.constant 0 : i32
    %c0_i32_1 = arith.constant 0 : i32
    return %arg1, %c0_i32, %c0_i32_0 : i32, i32, i32
  }
  func.func @transform_11(%arg0: i32, %arg1: i32) -> (i32, i32, i32) {
    %c0_i32 = arith.constant 0 : i32
    %c0_i32_0 = arith.constant 0 : i32
    %c0_i32_1 = arith.constant 0 : i32
    return %arg1, %c0_i32, %c0_i32_0 : i32, i32, i32
  }
  func.func @transform_12(%arg0: i32, %arg1: i32) -> (i32, i32, i32) {
    %c0_i32 = arith.constant 0 : i32
    %c0_i32_0 = arith.constant 0 : i32
    %c0_i32_1 = arith.constant 0 : i32
    return %arg1, %c0_i32, %c0_i32_0 : i32, i32, i32
  }
  func.func @transform_13(%arg0: i32, %arg1: i32) -> (i32, i32, i32) {
    %c0_i32 = arith.constant 0 : i32
    %c0_i32_0 = arith.constant 0 : i32
    %c0_i32_1 = arith.constant 0 : i32
    return %arg0, %c0_i32, %c0_i32_0 : i32, i32, i32
  }
}

</mosaic_0001>

<bundles_post_ra>
// kernel: tpu_custom_call.1
= control target key start
LH: loop header
LB: loop body
LE: loop exit
PB: predicated region body
PF: predicated region fallthrough
CT: control target
= control target key end

     0   :  { %s4339_s0 = inlined_call_operand.hbm [shape: f32[2,8,128], index: 0, kind: input, shape index: {}]   ;;  %s4340_s1 = inlined_call_operand.hbm [shape: bf16[2,128,384], index: 1, kind: input, shape index: {}]   ;;  %s4341_s2 = inlined_call_operand.hbm [shape: f32[2,1,384], index: 2, kind: input, shape index: {}]   ;;  %s4342_s3 = inlined_call_operand.hbm [shape: bf16[2,128,128], index: 3, kind: input, shape index: {}]   ;;  %s4343_s4 = inlined_call_operand.hbm [shape: f32[2,1,128], index: 4, kind: input, shape index: {}]   ;;  %s4344_s5 = inlined_call_operand.hbm [shape: f32[2,1,128], index: 5, kind: input, shape index: {}]   ;;  %s4345_s6 = inlined_call_operand.hbm [shape: f32[2,1,128], index: 6, kind: input, shape index: {}]   ;;  %s4346_s7 = inlined_call_operand.hbm [shape: f32[2,1,128], index: 7, kind: input, shape index: {}]   ;;  %s4347_s8 = inlined_call_operand.hbm [shape: f32[2,1,128], index: 8, kind: input, shape index: {}]   ;;  %s4348_s9 = inlined_call_operand.hbm [shape: bf16[2,128,512], index: 9, kind: input, shape index: {}]   ;;  %s4349_s10 = inlined_call_operand.vmem [shape: f32[2,1,512], index: 10, kind: input, shape index: {}]   ;;  %s4350_s11 = inlined_call_operand.hbm [shape: bf16[2,512,128], index: 11, kind: input, shape index: {}]   ;;  %s4351_s12 = inlined_call_operand.vmem [shape: f32[2,1,128], index: 12, kind: input, shape index: {}]   ;;  %s4352_s13 = inlined_call_operand.hbm [shape: f32[2,8,128], index: 13, kind: output, shape index: {}]  }
   0x1   :  { %4372 = sst [smem:[#allocation43_spill]] %s4339_s0 }
   0x2   :  { %4373 = sst [smem:[#allocation44_spill]] %s4340_s1 }
   0x3   :  { %4374 = sst [smem:[#allocation45_spill]] %s4341_s2 }
   0x4   :  { %4375 = sst [smem:[#allocation46_spill]] %s4342_s3 }
   0x5   :  { %4376 = sst [smem:[#allocation47_spill]] %s4343_s4 }
   0x6   :  { %4377 = sst [smem:[#allocation48_spill]] %s4344_s5 }
   0x7   :  { %4378 = sst [smem:[#allocation49_spill]] %s4345_s6 }
   0x8   :  { %4379 = sst [smem:[#allocation50_spill]] %s4346_s7 }
   0x9   :  { %4380 = sst [smem:[#allocation51_spill]] %s4347_s8 }
   0xa   :  { %4381 = sst [smem:[#allocation52_spill]] %s4348_s9 }
   0xb   :  { %4382 = sst [smem:[#allocation53_spill]] %s4349_s10 }
   0xc   :  { %4383 = sst [smem:[#allocation54_spill]] %s4350_s11 }
   0xd   :  { %4384 = sst [smem:[#allocation55_spill]] %s4351_s12 }
   0xe   :  { %4385 = sst [smem:[#allocation56_spill]] %s4352_s13 }
   0xf   :  { %18 = vsyncpa [#allocation6], 0 }
  0x10   :  { %20 = vsyncpa [#allocation6 + $0x1], 0 }
  0x11   :  { %21 = vsyncpa [#allocation9], 0 }
  0x12   :  { %23 = vsyncpa [#allocation9 + $0x1], 0 }
  0x13   :  { %24 = vsyncpa [#allocation12], 0 }
  0x14   :  { %26 = vsyncpa [#allocation12 + $0x1], 0 }
  0x15   :  { %27 = vsyncpa [#allocation15], 0 }
  0x16   :  { %29 = vsyncpa [#allocation15 + $0x1], 0 }
  0x17   :  { %30 = vsyncpa [#allocation18], 0 }
  0x18   :  { %32 = vsyncpa [#allocation18 + $0x1], 0 }
  0x19   :  { %33 = vsyncpa [#allocation21], 0 }
  0x1a   :  { %35 = vsyncpa [#allocation21 + $0x1], 0 }
  0x1b   :  { %36 = vsyncpa [#allocation7], 0 }
  0x1c   :  { %38 = vsyncpa [#allocation7 + $0x1], 0  ;;  %s3709_s25 = smov 0   ;;  %s3711_s26 = smov 0  }
  0x1d   :  { %s3713_s27 = smov 0   ;;  %s3715_s28 = smov 0  }
  0x1e   :  { %s3717_s29 = smov 0   ;;  %s3719_s30 = smov 0  }
  0x1f   :  { %s3721_s14 = smov 0   ;;  %s3723_s15 = smov 0  }
  0x20   :  { %s3725_s16 = smov 0   ;;  %s3727_s17 = smov 0  }
  0x21   :  { %s3729_s18 = smov 0  }
  0x22 LB: > { %4386 = sst [smem:[#allocation31_spill]] %s3595_s27  ;;  %p71_p0 = scmp.eq.s32.totalorder %s3627_s18, 0  ;;  %s3627_s18 = sphi %s3729_s18, %s44_s18   ;;  %s3623_s17 = sphi %s3727_s17, %s4442_s17   ;;  %s3619_s16 = sphi %s3725_s16, %s4448_s16   ;;  %s3615_s15 = sphi %s3723_s15, %s4440_s15   ;;  %s3611_s14 = sphi %s3721_s14, %s4447_s14   ;;  %s3607_s30 = sphi %s3719_s30, %s4439_s30   ;;  %s3603_s29 = sphi %s3717_s29, %s4446_s29   ;;  %s3599_s28 = sphi %s3715_s28, %s4445_s28   ;;  %s3595_s27 = sphi %s3713_s27, %s4437_s27   ;;  %s3591_s26 = sphi %s3711_s26, %s4444_s26   ;;  %s3587_s25 = sphi %s3709_s25, %s4443_s25  }
  0x23   : > { %4387 = sst [smem:[#allocation32_spill]] %s3599_s28  ;;  %p96_p1 = scmp.ne.s32.totalorder %s3595_s27, %s3591_s26 }
  0x24   : > { %4388 = sst [smem:[#allocation33_spill]] %s3607_s30  ;;  %p4363_p2 = scmp.lt.s32.totalorder %s3627_s18, 4 }
  0x25   : > { %4389 = sst [smem:[#allocation34_spill]] %s3611_s14  ;;  %p98_p3 = por %p96_p1, %p71_p0 }
  0x26   : > { %4390 = sst [smem:[#allocation35_spill]] %s3615_s15  ;;  %s3771_s19 = sand.u32 1, %s3627_s18  }
  0x27   : > { %4391 = sst [smem:[#allocation36_spill]] %s3623_s17  ;;  %s3774_s20 = sand.u32 1, %s3595_s27  }
  0x28   : > { %s2959_s21 = smul.u32 192, %s3774_s20  ;;  %p3779_p4 = pnand %p4363_p2, %p98_p3 }
  0x29   : > { %s2960_s23 = smul.u32 192, %s3619_s16  ;;  %s4393_s1 = sld [smem:[#allocation44_spill]] }
  0x2a   : > { %s461_s10 = scalar_lea.vmem [#allocation8], %s2959_s21  ;;  %s4355_s8 = scalar_lea.sflag [#allocation9], %s3771_s19 }
  0x2b   : > { %s469_s12 = sshll.u32 %s461_s10, 4  ;;  %s3629_s6 = smov 192   ;;  %s470_s12 = int_to_ptr.vmem [resolvable:$true] %s469_s12 }
  0x2c   : > { %s3630_s4 = smov 12   ;;  %p2444_p5 = scmp.ge.s32.totalorder %s3627_s18, 1 }
  0x2d   : > { %p660_p6 = scmp.lt.s32.totalorder %s3627_s18, 5  ;;  %s2435_s13 = sshll.u32 %s3774_s20, 6 }
  0x2e   : > { %s2848_s10 = sshll.u32 %s3619_s16, 6  ;;  %s4396_s3 = sld [smem:[#allocation46_spill]] }
  0x2f   : > { %s466_s15 = scalar_lea.hbm %s4393_s1, %s2960_s23  ;;  %p3795_p7 = pnand %p2444_p5, %p660_p6 }
  0x30   : > { %s467_s14 = sshll.u32 %s466_s15, 4  ;;  %s502_s15 = scalar_lea.vmem [#allocation11], %s2435_s13  ;;  %s468_s14 = int_to_ptr.hbm [resolvable:$true] %s467_s14 }
  0x31   : > { %2995 = dma.hbm_to_vmem [thread:$0]  (!%p3779_p4), %s468_s14, 3072, %s470_s12, %s4355_s8, %s3629_s6, %s3629_s6, %s3630_s4  }
  0x32   : > { %s4394_s21 = scalar_select %p3795_p7, 1, 0 }
  0x33   : > { %s510_s23 = sshll.u32 %s502_s15, 4  ;;  %s4361_s6 = scalar_lea.sflag [#allocation12], %s3771_s19  ;;  %s511_s23 = int_to_ptr.vmem [resolvable:$true] %s510_s23 }
  0x34   : > { %4395 = sst [smem:[#allocation37_spill]] %s4394_s21  ;;  %s507_s2 = scalar_lea.hbm %s4396_s3, %s2848_s10 }
  0x35   : > { %s508_s4 = sshll.u32 %s507_s2, 4  ;;  %s4357_s12 = smov 64   ;;  %s509_s4 = int_to_ptr.hbm [resolvable:$true] %s508_s4 }
  0x36   : > { %s4358_s14 = smov 4   ;;  %s4397_s5 = sld [smem:[#allocation48_spill]] }
  0x37   : > { %3001 = dma.hbm_to_vmem [thread:$0]  (!%p3779_p4), %s509_s4, 1024, %s511_s23, %s4361_s6, %s4357_s12, %s4357_s12, %s4358_s14  }
  0x38   : > { %s540_s2 = scalar_lea.vmem [#allocation14], %s3774_s20  ;;  %s4360_s8 = scalar_lea.sflag [#allocation15], %s3771_s19 }
  0x39   : > { %s547_s15 = sshll.u32 %s540_s2, 4  ;;  %s4398_s7 = sld [smem:[#allocation50_spill]]  ;;  %s548_s15 = int_to_ptr.vmem [resolvable:$true] %s547_s15 }
  0x3a   : > { %s574_s13 = scalar_lea.vmem [#allocation17], %s3774_s20  ;;  %s4359_s2 = scalar_lea.sflag [#allocation18], %s3771_s19 }
  0x3b   : > { %s581_s1 = sshll.u32 %s574_s13, 4  ;;  %s2849_s12 = sshll.u32 %s3619_s16, 8  ;;  %s582_s1 = int_to_ptr.vmem [resolvable:$true] %s581_s1 }
  0x3c   : > { %s543_s10 = scalar_lea.hbm %s4397_s5, %s3619_s16  ;;  %s4399_s9 = sld [smem:[#allocation52_spill]] }
  0x3d   : > { %s545_s24 = sshll.u32 %s543_s10, 4  ;;  %s2438_s10 = sshll.u32 %s3774_s20, 8  ;;  %s546_s24 = int_to_ptr.hbm [resolvable:$true] %s545_s24 }
  0x3e   : > { %3007 = dma.hbm_to_vmem [thread:$0]  (!%p3779_p4), %s546_s24, 16, %s548_s15, %s4360_s8  }
  0x3f   : > { %s577_s23 = scalar_lea.hbm %s4398_s7, %s3619_s16  ;;  %s609_s3 = scalar_lea.vmem [#allocation20], %s2438_s10 }
  0x40   : > { %s579_s4 = sshll.u32 %s577_s23, 4  ;;  %s617_s21 = sshll.u32 %s609_s3, 4  ;;  %s580_s4 = int_to_ptr.hbm [resolvable:$true] %s579_s4  ;;  %s618_s21 = int_to_ptr.vmem [resolvable:$true] %s617_s21 }
  0x41   : > { %3013 = dma.hbm_to_vmem [thread:$0]  (!%p3779_p4), %s580_s4, 16, %s582_s1, %s4359_s2  }
  0x42   : > { %s614_s24 = scalar_lea.hbm %s4399_s9, %s2849_s12  ;;  %s4362_s13 = scalar_lea.sflag [#allocation21], %s3771_s19 }
  0x43   : > { %s615_s23 = sshll.u32 %s614_s24, 4  ;;  %s3633_s4 = smov 256   ;;  %s616_s23 = int_to_ptr.hbm [resolvable:$true] %s615_s23 }
  0x44   : > { %s3634_s1 = smov 16   ;;  %s4400_s11 = sld [smem:[#allocation54_spill]] }
  0x45   : > { %3019 = dma.hbm_to_vmem [thread:$0]  (!%p3779_p4), %s616_s23, 4096, %s618_s21, %s4362_s13, %s3633_s4, %s3633_s4, %s3634_s1  }
  0x46   : > { %s638_s3 = scalar_lea.vmem [#allocation22], %s2438_s10  ;;  %s3849_s6 = sadd.s32 4294967295, %s3627_s18  }
  0x47   : > { %s646_s2 = sshll.u32 %s638_s3, 4  ;;  %s2429_s21 = sadd.s32 4294967294, %s3627_s18   ;;  %s3844_s2 = int_to_ptr.vmem [resolvable:$true] %s646_s2 }
  0x48   : > { %s53_s23 = sadd.s32 1, %s3619_s16  ;;  %s63_s10 = sadd.s32 1, %s3607_s30 }
  0x49   : > { %p54_p8 = scmp.ge.s32.totalorder %s53_s23, 2  ;;  %p70_p9 = scmp.ne.s32.totalorder %s3607_s30, %s3603_s29 }
  0x4a   : > { %s643_s24 = scalar_lea.hbm %s4400_s11, %s2849_s12  ;;  %s56_s12 = sadd.s32 1, %s3623_s17 }
  0x4b   : > { %s644_s8 = sshll.u32 %s643_s24, 4  ;;  %s4450_s23 = smov (%p54_p8, %s53_s23), 0  ;;  %s3846_s8 = int_to_ptr.hbm [resolvable:$true] %s644_s8 }
  0x4c   : > { %4401 = sst [smem:[#allocation38_spill]] %s4450_s23  ;;  %s4452_s12 = smov (!%p54_p8, %s56_s12), %s3623_s17 }
  0x4d   : > { %p3865_p10 = por %p71_p0, %p70_p9  ;;  %p76_p11 = scmp.ne.s32.totalorder %s3603_s29, %s3599_s28 }
  0x4e   : > { %p58_p12 = scmp.ge.s32.totalorder %s4452_s12, 2  ;;  %p77_p13 = scmp.eq.s32.totalorder %s3849_s6, 0 }
  0x4f   : > { %s86_s1 = ssub.s32 %s3619_s16, %s4450_s23  ;;  %s89_s14 = sadd.s32 1, %s3595_s27 }
  0x50   : > { %s4454_s12 = smov (%p58_p12, %s4452_s12), 0  ;;  %p3880_p1 = por %p77_p13, %p76_p11 }
  0x51   : > { %4403 = sst [smem:[#allocation39_spill]] %s4454_s12  ;;  %p87_p0 = scmp.eq.s32.totalorder %s86_s1, 0 }
  0x52   : > { %s4404_s15 = scalar_select %p3880_p1, 1, 0 }
  0x53   : > { %s60_s24 = ssub.s32 %s3623_s17, %s4454_s12  ;;  %p102_p3 = scmp.ne.s32.totalorder %s3591_s26, %s3587_s25 }
  0x54   : > { %p61_p5 = scmp.eq.s32.totalorder %s60_s24, 0  ;;  %p412_p6 = scmp.eq.s32.totalorder %s3849_s6, 3 }
  0x55   : > { %s3890_s3 = scalar_select %p87_p0, %s3595_s27, %s89_s14  }
  0x56   : > { %s3893_s13 = scalar_select %p61_p5, %s3607_s30, %s63_s10  }
  0x57   : > { %4405 = sst [smem:[#allocation40_spill]] %s3890_s3  ;;  %p3895_p8 = por %p102_p3, %p77_p13 }
  0x58   : > { %4406 = sst [smem:[#allocation41_spill]] %s3893_s13  ;;  %p3902_p12 = por %p412_p6, %p70_p9 }
  0x59   : > { %p418_p2 = scmp.eq.s32.totalorder %s2429_s21, 3  ;;  %s438_s25 = sand.u32 1, %s3607_s30  }
  0x5a   : > { %s2432_s1 = sshll.u32 %s438_s25, 3  ;;  %s2433_s10 = sshll.u32 %s3623_s17, 3 }
  0x5b   : > { %p3910_p1 = por %p418_p2, %p76_p11  ;;  %s442_s24 = scalar_lea.vmem [#allocation5], %s2432_s1 }
  0x5c   : > { %s450_s9 = sshll.u32 %s442_s24, 4  ;;  %s4411_s0 = sld [smem:[#allocation43_spill]]  ;;  %s451_s9 = int_to_ptr.vmem [resolvable:$true] %s450_s9 }
  0x5d   : > { %s4409_s14 = scalar_select %p3910_p1, 1, 0 }
  0x5e   : > { %p4412_p9 = scmp.lt.s32.totalorder %s3627_s18, 4  ;;  %s2961_s21 = smul.u32 3, %s3774_s20 }
  0x5f   : > { %4410 = sst [smem:[#allocation42_spill]] %s4409_s14  ;;  %s2962_s30 = smul.u32 3, %s3619_s16 }
  0x60   : > { %p2990_p13 = pnand %p4412_p9, %p3865_p10  ;;  %s439_s1 = scalar_lea.sflag [#allocation6], %s438_s25 }
  0x61   : > { %s4413_s12 = sld [smem:[#allocation45_spill]]  ;;  %s4414_s4 = scalar_lea.sflag [#allocation9], %s3771_s19 }
  0x62   : > { %s446_s23 = scalar_lea.hbm %s4411_s0, %s2433_s10  ;;  %s483_s0 = scalar_lea.vmem [#allocation10], %s2961_s21 }
  0x63   : > { %s448_s13 = sshll.u32 %s446_s23, 4  ;;  %s491_s23 = sshll.u32 %s483_s0, 4  ;;  %s449_s13 = int_to_ptr.hbm [resolvable:$true] %s448_s13  ;;  %s492_s23 = int_to_ptr.vmem [resolvable:$true] %s491_s23 }
  0x64   : > { %2992 = dma.hbm_to_vmem [thread:$0]  (!%p2990_p13), %s449_s13, 128, %s451_s9, %s439_s1  }
  0x65   : > { %s4415_s27 = sld [smem:[#allocation47_spill]]  ;;  %s523_s1 = scalar_lea.vmem [#allocation13], %s3774_s20 }
  0x66   : > { %s4416_s0 = scalar_lea.sflag [#allocation12], %s3771_s19  ;;  %s4417_s24 = sld [smem:[#allocation49_spill]] }
  0x67   : > { %s487_s17 = scalar_lea.hbm %s4413_s12, %s2962_s30  ;;  %s530_s30 = sshll.u32 %s523_s1, 4  ;;  %s531_s30 = int_to_ptr.vmem [resolvable:$true] %s530_s30 }
  0x68   : > { %s489_s10 = sshll.u32 %s487_s17, 4  ;;  %s557_s11 = scalar_lea.vmem [#allocation16], %s3774_s20  ;;  %s490_s10 = int_to_ptr.hbm [resolvable:$true] %s489_s10 }
  0x69   : > { %2998 = dma.hbm_to_vmem [thread:$0]  (!%p3779_p4), %s490_s10, 48, %s492_s23, %s4414_s4  }
  0x6a   : > { %s564_s12 = sshll.u32 %s557_s11, 4  ;;  %s4418_s10 = scalar_lea.sflag [#allocation15], %s3771_s19  ;;  %s565_s12 = int_to_ptr.vmem [resolvable:$true] %s564_s12 }
  0x6b   : > { %s526_s9 = scalar_lea.hbm %s4415_s27, %s3619_s16  ;;  %s4419_s25 = sld [smem:[#allocation51_spill]] }
  0x6c   : > { %s528_s13 = sshll.u32 %s526_s9, 4  ;;  %s560_s3 = scalar_lea.hbm %s4417_s24, %s3619_s16  ;;  %s529_s13 = int_to_ptr.hbm [resolvable:$true] %s528_s13 }
  0x6d   : > { %3004 = dma.hbm_to_vmem [thread:$0]  (!%p3779_p4), %s529_s13, 16, %s531_s30, %s4416_s0  }
  0x6e   : > { %s562_s27 = sshll.u32 %s560_s3, 4  ;;  %s591_s14 = scalar_lea.vmem [#allocation19], %s3774_s20  ;;  %s563_s27 = int_to_ptr.hbm [resolvable:$true] %s562_s27 }
  0x6f   : > { %3010 = dma.hbm_to_vmem [thread:$0]  (!%p3779_p4), %s563_s27, 16, %s565_s12, %s4418_s10  }
  0x70   : > { %s598_s28 = sshll.u32 %s591_s14, 4  ;;  %s4420_s13 = scalar_lea.sflag [#allocation18], %s3771_s19  ;;  %s599_s28 = int_to_ptr.vmem [resolvable:$true] %s598_s28 }
  0x71   : > { %s594_s9 = scalar_lea.hbm %s4419_s25, %s3619_s16  ;;  %s4421_s30 = smov 4  }
  0x72   : > { %s596_s1 = sshll.u32 %s594_s9, 4  ;;  %s4422_s0 = smov 64   ;;  %s597_s1 = int_to_ptr.hbm [resolvable:$true] %s596_s1 }
  0x73   : > { %3016 = dma.hbm_to_vmem [thread:$0]  (!%p3779_p4), %s597_s1, 16, %s599_s28, %s4420_s13  }
  0x74   : > { %s4423_s17 = scalar_lea.sflag [#allocation21], %s3771_s19  ;;  %664 = sbr.rel (%p3795_p7) target bundleno = 2314 (0x90a), region = 72 }
  0x75   : > { %3022 = dma.hbm_to_vmem [thread:$0]  (!%p3779_p4), %s3846_s8, 4096, %s3844_s2, %s4423_s17, %s4422_s0, %s4422_s0, %s4421_s30  }
  0x76   : > { %s3970_s24 = sand.u32 (!%p3795_p7), 1, %s3603_s29   ;;  %p4425_p2 = scmp.ne.s32.totalorder (!%p3795_p7), %s4404_s15, 0 }
  0x77   : > { %s2445_s20 = sshll.u32 (!%p3795_p7), %s3970_s24, 3  ;;  %s667_s14 = scalar_lea.sflag (!%p3795_p7), [#allocation6], %s3970_s24 }
  0x78   : > { %s3976_s28 = scalar_lea.vmem (!%p3795_p7), [#allocation5], %s2445_s20 }
  0x79   : > { %3558 = dma.done.wait (%p4425_p2), %s667_s14, 128  }
  0x7a   : > { %3560 = vsyncadd (%p4425_p2), %s667_s14, 4294967168  ;;  %s3983_s8 = sand.u32 1, %s3849_s6   ;;  %s3986_s19 = sand.u32 1, %s3591_s26  }
  0x7b   : > { %s2963_s22 = smul.u32 192, %s3986_s19  ;;  %s677_s2 = scalar_lea.sflag [#allocation9], %s3983_s8 }
  0x7d   : > { %s3990_s3 = scalar_lea.vmem [#allocation8], %s2963_s22 }
  0x7e   : > { %3562 = dma.done.wait (%p3895_p8), %s677_s2, 3120  }
  0x7f   : > { %3564 = vsyncadd (%p3895_p8), %s677_s2, 4294964176  ;;  %s2964_s15 = smul.u32 3, %s3986_s19  ;;  %s2446_s6 = sshll.u32 %s3986_s19, 6 }
  0x80   : > { %s697_s11 = scalar_lea.sflag [#allocation12], %s3983_s8  ;;  %s4001_s12 = scalar_lea.vmem [#allocation11], %s2446_s6 }
  0x81   : > { %s3998_s27 = scalar_lea.vmem [#allocation10], %s2964_s15 }
  0x82   : > { %3566 = dma.done.wait (%p3895_p8), %s697_s11, 1040  }
  0x83   : > { %3568 = vsyncadd (%p3895_p8), %s697_s11, 4294966256  ;;  %s709_s10 = scalar_lea.vmem [#allocation13], %s3986_s19  ;;  %s716_s23 = scalar_lea.sflag [#allocation15], %s3983_s8 }
  0x84   : > { %s718_s4 = scalar_lea.vmem [#allocation14], %s3986_s19 }
  0x85   : > { %3570 = dma.done.wait (%p3895_p8), %s716_s23, 32  }
  0x86   : > { %3572 = vsyncadd (%p3895_p8), %s716_s23, 4294967264  ;;  %s727_s25 = scalar_lea.vmem [#allocation16], %s3986_s19  ;;  %s734_s9 = scalar_lea.sflag [#allocation18], %s3983_s8 }
  0x87   : > { %s736_s1 = scalar_lea.vmem [#allocation17], %s3986_s19 }
  0x88   : > { %3574 = dma.done.wait (%p3895_p8), %s734_s9, 32  }
  0x89   : > { %3576 = vsyncadd (%p3895_p8), %s734_s9, 4294967264  ;;  %s2447_s13 = sshll.u32 %s3986_s19, 8  ;;  %s752_s0 = scalar_lea.sflag [#allocation21], %s3983_s8 }
  0x8a   : > { %s4024_s17 = scalar_lea.vmem [#allocation20], %s2447_s13 }
  0x8b   : > { %3578 = dma.done.wait (%p3895_p8), %s752_s0, 8192  }
  0x8c   : > { %3580 = vsyncadd (%p3895_p8), %s752_s0, 4294959104  ;;  %s4426_s21 = sld [smem:[#allocation34_spill]]  ;;  %s4044_s5 = scalar_lea.vmem [#allocation22], %s2447_s13 }
  0x8d   : > { %s4427_s6 = sld [smem:[#allocation55_spill]]  ;;  %s4048_s0 = scalar_lea.vmem [#allocation23], %s2445_s20 }
  0x8e   : > { %s4428_s9 = sld [smem:[#allocation53_spill]] }
  0x92   : > { %p861_p4 = scmp.lt.s32.totalorder %s4426_s21, 1  ;;  %p2451_p7 = scmp.ne.s32.totalorder %s4426_s21, 0 }
  0x94   : > { %s4032_s14 = scalar_select %p861_p4, %s4426_s21, 1 }
  0x95   : > { %872 = sbr.rel (%p2451_p7) target bundleno = 156 (0x9c), region = 120 }
  0x96   : > { %s2450_s22 = sshll.u32 %s4032_s14, 2  ;;  %s867_s8 = scalar_lea.vmem %s4427_s6, %s4032_s14 }
  0x97   : > { %s4042_s30 = scalar_lea.vmem %s4428_s9, %s2450_s22 }
  0x9a   : > { %v873_v0 = vld [vmem:[%s3976_s28] sm:$0xff] }
  0x9b   : > { %874 = vst [vmem:[%s4048_s0] sm:$0xff] %v873_v0 }
  0x9c PF: > { %v3635_v2 = vmov 128.0   ;;  %v2538_v3 = vld [vmem:[%s3990_s3 + $0xa8] sm:$0xf]  ;;  %v2873_v4 = vld [vmem:[%s3990_s3 + $0xb0] sm:$0xf0]  ;;  %s3636_s20 = smov 64  }
  0x9d   : > { %3133 = vrcp.f32 %v3635_v2  ;;  %v2872_v5 = vld [vmem:[%s3990_s3 + $0xac] sm:$0xf]  ;;  %v2539_v6 = vor.u32 %v2873_v4, %v2538_v3  ;;  %v2540_v7 = vld [vmem:[%s3990_s3 + $0xb4] sm:$0xf0]  ;;  %v2546_v8 = vld [vmem:[%s3990_s3 + $0xb0] sm:$0xf] }
  0x9e   : > { %v2874_v9 = vld [vmem:[%s3990_s3 + $0xb8] sm:$0xf0]  ;;  %v2543_v10 = vor.u32 %v2872_v5, %v2540_v7  ;;  %v2526_v22 = vld [vmem:[%s3990_s3 + $0x90] sm:$0xf]  ;;  %v2869_v24 = vld [vmem:[%s3990_s3 + $0x94] sm:$0xf] }
  0x9f   : > { %v2547_v11 = vor.u32 %v2874_v9, %v2546_v8  ;;  %1082 = vmatpush.bf16.msra.mxu0 %v2539_v6  ;;  %v2870_v23 = vld [vmem:[%s3990_s3 + $0x98] sm:$0xf0]  ;;  %v2528_v26 = vld [vmem:[%s3990_s3 + $0x9c] sm:$0xf0]  ;;  %v2534_v27 = vld [vmem:[%s3990_s3 + $0x98] sm:$0xf] }
  0xa0   : > { %1095 = vmatpush.bf16.msra.mxu1 %v2543_v10  ;;  %v2527_v25 = vor.u32 %v2870_v23, %v2526_v22  ;;  %v2871_v28 = vld [vmem:[%s3990_s3 + $0xa0] sm:$0xf0]  ;;  %v2531_v29 = vor.u32 %v2869_v24, %v2528_v26  ;;  %v2514_v31 = vld [vmem:[%s3990_s3 + $0x78] sm:$0xf]  ;;  %v2866_v33 = vld [vmem:[%s3990_s3 + $0x7c] sm:$0xf] }
  0xa1   : > { %1108 = vmatpush.bf16.msra.mxu2 %v2547_v11  ;;  %v2535_v30 = vor.u32 %v2871_v28, %v2534_v27  ;;  %v2867_v32 = vld [vmem:[%s3990_s3 + $0x80] sm:$0xf0]  ;;  %v2516_v35 = vld [vmem:[%s3990_s3 + $0x84] sm:$0xf0]  ;;  %v2522_v36 = vld [vmem:[%s3990_s3 + $0x80] sm:$0xf] }
  0xa2   : > { %v4054_v1 = vld [vmem:[%s4048_s0] sm:$0xff]  ;;  %v2515_v34 = vor.u32 %v2867_v32, %v2514_v31  ;;  %v2868_v37 = vld [vmem:[%s3990_s3 + $0x88] sm:$0xf0]  ;;  %v2519_v38 = vor.u32 %v2866_v33, %v2516_v35  ;;  %v2502_v40 = vld [vmem:[%s3990_s3 + $0x60] sm:$0xf]  ;;  %s3637_s28 = smov 96  }
  0xa3   : > { %878 = vadd.xlane.f32.xlu0 %v4054_v1  ;;  %v3134_v12 = vpop.eup %3133  ;;  %1083 = vmatpush.bf16.msra.mxu0 %v2527_v25  ;;  %v2523_v39 = vor.u32 %v2868_v37, %v2522_v36  ;;  %v2864_v41 = vld [vmem:[%s3990_s3 + $0x68] sm:$0xf0]  ;;  %v2863_v42 = vld [vmem:[%s3990_s3 + $0x64] sm:$0xf]  ;;  %v2504_v44 = vld [vmem:[%s3990_s3 + $0x6c] sm:$0xf0] }
  0xa4   : > { %v881_v13 = vmul.f32 128.0, %v3134_v12  ;;  %vm885_vm0 = vweird.f32 %v3134_v12  ;;  %1096 = vmatpush.bf16.msra.mxu1 %v2531_v29  ;;  %v2503_v43 = vor.u32 %v2864_v41, %v2502_v40  ;;  %v2510_v45 = vld [vmem:[%s3990_s3 + $0x68] sm:$0xf]  ;;  %v2865_v46 = vld [vmem:[%s3990_s3 + $0x70] sm:$0xf0]  ;;  %v2507_v47 = vor.u32 %v2863_v42, %v2504_v44  ;;  %s2128_s22 = sshll.u32 %s4048_s0, 4  ;;  %s2129_s22 = int_to_ptr.vmem [resolvable:$true] %s2128_s22 }
  0xa5   : > { %1109 = vmatpush.bf16.msra.mxu2 %v2535_v30  ;;  %v2511_v48 = vor.u32 %v2865_v46, %v2510_v45  ;;  %v2490_v49 = vld [vmem:[%s3990_s3 + $0x48] sm:$0xf]  ;;  %v2861_v50 = vld [vmem:[%s3990_s3 + $0x50] sm:$0xf0]  ;;  %v2860_v51 = vld [vmem:[%s3990_s3 + $0x4c] sm:$0xf] }
  0xa6   : > { %v882_v14 = vsub.f32 1.0, %v881_v13  ;;  %v2491_v52 = vor.u32 %v2861_v50, %v2490_v49  ;;  %v2492_v53 = vld [vmem:[%s3990_s3 + $0x54] sm:$0xf0]  ;;  %v2498_v54 = vld [vmem:[%s3990_s3 + $0x50] sm:$0xf]  ;;  %vm1128_vm4 = vcmask 261120  }
  0xa7   : > { %1084 = vmatpush.bf16.msra.mxu0 %v2515_v34  ;;  %v2862_v55 = vld [vmem:[%s3990_s3 + $0x58] sm:$0xf0]  ;;  %v2495_v56 = vor.u32 %v2860_v51, %v2492_v53  ;;  %v2478_v58 = vld [vmem:[%s3990_s3 + $0x30] sm:$0xf]  ;;  %v2857_v60 = vld [vmem:[%s3990_s3 + $0x34] sm:$0xf] }
  0xa8   : > { %v883_v15 = vmul.f32 %v3134_v12, %v882_v14  ;;  %1097 = vmatpush.bf16.msra.mxu1 %v2519_v38  ;;  %v2499_v57 = vor.u32 %v2862_v55, %v2498_v54  ;;  %v2858_v59 = vld [vmem:[%s3990_s3 + $0x38] sm:$0xf0]  ;;  %v2480_v62 = vld [vmem:[%s3990_s3 + $0x3c] sm:$0xf0]  ;;  %v2486_v63 = vld [vmem:[%s3990_s3 + $0x38] sm:$0xf] }
  0xa9   : > { %1110 = vmatpush.bf16.msra.mxu2 %v2523_v39  ;;  %v2479_v61 = vor.u32 %v2858_v59, %v2478_v58  ;;  %v2859_v0 = vld [vmem:[%s3990_s3 + $0x40] sm:$0xf0]  ;;  %v2483_v2 = vor.u32 %v2857_v60, %v2480_v62  ;;  %v2466_v4 = vld [vmem:[%s3990_s3 + $0x18] sm:$0xf]  ;;  %v2854_v6 = vld [vmem:[%s3990_s3 + $0x1c] sm:$0xf] }
  0xaa   : > { %v884_v16 = vadd.f32 %v3134_v12, %v883_v15  ;;  %v2487_v3 = vor.u32 %v2859_v0, %v2486_v63  ;;  %v2855_v5 = vld [vmem:[%s3990_s3 + $0x20] sm:$0xf0]  ;;  %v2468_v8 = vld [vmem:[%s3990_s3 + $0x24] sm:$0xf0]  ;;  %v2474_v9 = vld [vmem:[%s3990_s3 + $0x20] sm:$0xf] }
  0xab   : > { %1085 = vmatpush.bf16.msra.mxu0 %v2503_v43  ;;  %v2467_v7 = vor.u32 %v2855_v5, %v2466_v4  ;;  %v2856_v10 = vld [vmem:[%s3990_s3 + $0x28] sm:$0xf0]  ;;  %v2471_v11 = vor.u32 %v2854_v6, %v2468_v8  ;;  %v2454_v13 = vld [vmem:[%s3990_s3] sm:$0xf]  ;;  %v2851_v15 = vld [vmem:[%s3990_s3 + $0x4] sm:$0xf] }
  0xac   : > { %v4063_v17 = vsel %vm885_vm0, %v3134_v12, %v884_v16  ;;  %1098 = vmatpush.bf16.msra.mxu1 %v2507_v47  ;;  %v2475_v12 = vor.u32 %v2856_v10, %v2474_v9  ;;  %v2852_v14 = vld [vmem:[%s3990_s3 + $0x8] sm:$0xf0]  ;;  %v3127_v33 = vld [vmem:[%s718_s4] ss:$0 sm:$0xff]  ;;  %vm1164_vm5 = vcmask 1043456   ;;  %vm1148_vm6 = vcmask 64512  }
  0xad   : > { %1111 = vmatpush.bf16.msra.mxu2 %v2511_v48  ;;  %v2455_v16 = vor.u32 %v2852_v14, %v2454_v13  ;;  %v3128_v36 = vld [vmem:[%s727_s25] ss:$0 sm:$0xff]  ;;  %vm1182_vm7 = vcmask 257024   ;;  %vm1257_vm8 = vcmask 519424   ;;  %vm1332_vm9 = vcmask 781824   ;;  %s2116_s14 = scalar_lea.sflag [#allocation7], %s3970_s24 }
  0xae   : > { %v946_v40 = vld [vmem:[%s3998_s27] sm:$0x7]  ;;  %vm1407_vm10 = vcmask 1044224   ;;  %s4429_s27 = scalar_lea.vmem [#allocation19], %s3986_s19  ;;  %s4430_s19 = sld [smem:[#allocation35_spill]] }
  0xaf   : > { %1086 = vmatpush.bf16.msra.mxu0 %v2491_v52  ;;  %v948_v41 = vperm.slane %v946_v40, 0  ;;  %v949_v42 = vperm.slane %v946_v40, 1  ;;  %v950_v48 = vperm.slane %v946_v40, 2 }
  0xb0   : > { %1099 = vmatpush.bf16.msra.mxu1 %v2495_v56 }
  0xb1   : > { %1112 = vmatpush.bf16.msra.mxu2 %v2499_v57 }
  0xb3   : > { %1087 = vmatpush.bf16.msra.mxu0 %v2479_v61 }
  0xb4   : > { %1100 = vmatpush.bf16.msra.mxu1 %v2483_v2  ;;  %s2845_s25 = sshll.u32 %s4430_s19, 3 }
  0xb5   : > { %1113 = vmatpush.bf16.msra.mxu2 %v2487_v3 }
  0xb7   : > { %1088 = vmatpush.bf16.msra.mxu0 %v2467_v7 }
  0xb8   : > { %1101 = vmatpush.bf16.msra.mxu1 %v2471_v11 }
  0xb9   : > { %1114 = vmatpush.bf16.msra.mxu2 %v2475_v12 }
  0xbb   : > { %1089 = vmatpush.bf16.msra.mxu0 %v2455_v16 }
 0x116   : > { %v879_v18 = vpop.xlane.xlu0 %878 }
 0x117   : > { %v887_v19 = vmul.f32 %v4063_v17, %v879_v18  ;;  %v2456_v18 = vld [vmem:[%s3990_s3 + $0xc] sm:$0xf0] }
 0x118   : > { %v2459_v22 = vor.u32 %v2851_v15, %v2456_v18 }
 0x119   : > { %v4067_v20 = vsub.f32 %v4054_v1, %v887_v19  ;;  %v2462_v19 = vld [vmem:[%s3990_s3 + $0x8] sm:$0xf] }
 0x11a   : > { %1102 = vmatpush.bf16.msra.mxu1 %v2459_v22 }
 0x11b   : > { %v889_v21 = vmul.f32 %v4067_v20, %v4067_v20 }
 0x11d   : > { %890 = vadd.xlane.f32.xlu0 %v889_v21  ;;  %v2853_v21 = vld [vmem:[%s3990_s3 + $0x10] sm:$0xf0]  ;;  %s3638_s3 = smov 32  }
 0x11e   : > { %v2463_v23 = vor.u32 %v2853_v21, %v2462_v19 }
 0x120   : > { %1115 = vmatpush.bf16.msra.mxu2 %v2463_v23 }
 0x190   : > { %v891_v24 = vpop.xlane.xlu0 %890 }
 0x191   : > { %v892_v25 = vmul.f32 %v891_v24, %v4063_v17 }
 0x193   : > { %v893_v26 = vadd.f32 1e-05, %v892_v25 }
 0x195   : > { %3135 = vrsqrt.f32 %v893_v26  ;;  %vm900_vm2 = vweird.f32 %v893_v26 }
 0x19b   : > { %v3136_v27 = vpop.eup %3135 }
 0x19c   : > { %v895_v28 = vmul.f32 %v3136_v27, %v893_v26  ;;  %vm901_vm1 = vweird.f32 %v3136_v27 }
 0x19d   : > { %vm902_vm3 = vmor %vm900_vm2, %vm901_vm1 }
 0x19e   : > { %v896_v29 = vmul.f32 %v3136_v27, %v895_v28 }
 0x1a0   : > { %v897_v30 = vmul.f32 0.5, %v896_v29 }
 0x1a2   : > { %v898_v31 = vsub.f32 1.5, %v897_v30 }
 0x1a4   : > { %v899_v32 = vmul.f32 %v3136_v27, %v898_v31 }
 0x1a6   : > { %v903_v34 = vsel %vm902_vm3, %v3136_v27, %v899_v32 }
 0x1a7   : > { %v904_v35 = vmul.f32 %v903_v34, %v4067_v20 }
 0x1a9   : > { %v908_v37 = vmul.f32 %v3127_v33, %v904_v35 }
 0x1ab   : > { %v912_v38 = vadd.f32 %v3128_v36, %v908_v37 }
 0x1ad   : > { %v913_v39 = vpack.c.bf16 %v912_v38, %v912_v38 }
 0x1af   : > { %1090 = vmatmul.bf16.vlgmr.msra.gmra.mxu0 %v913_v39  ;;  %1103 = vmatmul.bf16.vlgmr.msra.gmra.mxu1 %v913_v39 }
 0x1b0   : > { %1116 = vmatmul.bf16.vlgmr.msra.gmra.mxu2 %v913_v39 }
 0x22c   : > { %v1091_v43 = vpop.f32.mrf.mxu0  ;;  %v1104_v44 = vpop.f32.mrf.mxu1 }
 0x22d   : > { %v1092_v45 = vadd.f32 %v1091_v43, %v948_v41  ;;  %v1105_v46 = vadd.f32 %v1104_v44, %v949_v42 }
 0x22f   : > { %v1121_v47 = vpack.c.bf16 %v1105_v46, %v1092_v45 }
 0x231   : > { %1123 = vst [vmem:[#allocation2] sm:$0xff] %v1121_v47  ;;  %v2954_v49 = vunpack.c.h.b16 %v1121_v47  ;;  %v2949_v55 = vunpack.c.l.b16 %v1121_v47 }
 0x233   : > { %v1117_v20 = vpop.f32.mrf.mxu2  ;;  %v1269_v50 = vpack.c.b16 %v2954_v49, %v2954_v49  ;;  %v1189_v59 = vpack.c.b16 %v2949_v55, %v2949_v55 }
 0x234   : > { %v1118_v51 = vadd.f32 %v1117_v20, %v950_v48  ;;  %v1093_v52 = vpop.f32.mrf.mxu0  ;;  %v1106_v53 = vpop.f32.mrf.mxu1 }
 0x235   : > { %1270 = vrot.lane.b32.xlu0 %v1269_v50, %s3636_s20  ;;  %1195 = vrot.lane.b32.xlu2 %v1269_v50, %s3637_s28 }
 0x236   : > { %v1122_v54 = vpack.c.bf16 %v1118_v51, %v1118_v51 }
 0x238   : > { %1124 = vst [vmem:[#allocation2 + $0x8] sm:$0xf] %v1122_v54  ;;  %v1126_v56 = vld [vmem:[#allocation2 + $0x4] sm:$0xf]  ;;  %v1125_v62 = vld [vmem:[#allocation2] sm:$0xf] }
 0x239   : > { %v1133_v57 = vsel %vm1128_vm4, %v1126_v56, 0 }
 0x23a   : > { %1142 = vmatpush.bf16.xpose.msra.mxu3 %v1133_v57 }
 0x23b   : > { %v1119_v58 = vpop.f32.mrf.mxu2 }
 0x23d   : > { %1190 = vrot.lane.b32.xlu2 %v1189_v59, %s3637_s28 }
 0x23f   : > { %v1127_v60 = vld [vmem:[#allocation2 + $0x8] sm:$0xf] }
 0x240   : > { %v1166_v61 = vsel %vm1164_vm5, %v1127_v60, 0  ;;  %v1186_v15 = vld [vmem:[#allocation2 + $0x8] sm:$0xf] }
 0x241   : > { %2548 = vmatmul.msk.bf16.vlgmr.msra.gmra.mxu3 %vm1128_vm4, %v1125_v62  ;;  %v1229_v16 = vunpack.c.l.b16 %v1186_v15  ;;  %v1261_v54 = vld [vmem:[#allocation2 + $0x8] sm:$0xf] }
 0x242   : > { %1175 = vmatpush.bf16.msrb.mxu3 %v1166_v61  ;;  %v1304_v55 = vunpack.c.l.b16 %v1261_v54  ;;  %v1336_v57 = vld [vmem:[#allocation2 + $0x8] sm:$0xf] }
 0x243   : > { %v1230_v21 = vpack.c.b16 %v1229_v16, %v1229_v16  ;;  %v1379_v58 = vunpack.c.l.b16 %v1336_v57  ;;  %v2907_v57 = vld [vmem:[%s4024_s17 + $0xc4] sm:$0xf] }
 0x244   : > { %v1305_v56 = vpack.c.b16 %v1304_v55, %v1304_v55  ;;  %v2686_v55 = vld [vmem:[%s4024_s17 + $0xc0] sm:$0xf] }
 0x245   : > { %1265 = vrot.lane.b32.xlu2 %v1189_v59, %s3636_s20 }
 0x24d   : > { %1340 = vrot.lane.b32.xlu2 %v1189_v59, %s3638_s3  ;;  %v1380_v59 = vpack.c.b16 %v1379_v58, %v1379_v58 }
 0x28f   : > { %v1196_v63 = vpop.permute.xlu2 %1195 }
 0x290   : > { %v1201_v0 = vsel %vm1128_vm4, %v1196_v63, 0 }
 0x291   : > { %1210 = vmatpush.bf16.xpose.msra.mxu3 %v1201_v0 }
 0x297   : > { %v1191_v2 = vpop.permute.xlu2 %1190 }
 0x29f   : > { %v1266_v5 = vpop.permute.xlu2 %1265 }
 0x2a7   : > { %v1271_v3 = vpop.permute.xlu0 %1270  ;;  %v1341_v31 = vpop.permute.xlu2 %1340 }
 0x2a8   : > { %v1276_v4 = vsel %vm1128_vm4, %v1271_v3, 0 }
 0x2a9   : > { %1285 = vmatpush.bf16.xpose.msrb.mxu2 %v1276_v4 }
 0x2b0   : > { %2552 = vmatmul.msk.bf16.vlgmr.msrb.gmra.mxu2 %vm1128_vm4, %v1266_v5 }
 0x2c4   : > { %v1144_v6 = vpop.f32.mrf.mxu3 }
 0x2c5   : > { %v1149_v7 = vsel %vm1148_vm6, %v1144_v6, -inf }
 0x2c6   : > { %1150 = vmax.xlane.f32.xlu1 %v1149_v7 }
 0x2cc   : > { %v1146_v8 = vpop.f32.mrf.mxu3 }
 0x333   : > { %v1287_v9 = vpop.f32.mrf.mxu2 }
 0x334   : > { %v1291_v10 = vsel %vm1148_vm6, %v1287_v9, -inf }
 0x335   : > { %1292 = vmax.xlane.f32.xlu0 %v1291_v10 }
 0x339   : > { %v1151_v11 = vpop.xlane.xlu1 %1150 }
 0x33a   : > { %v1152_v12 = vsub.f32 %v1144_v6, %v1151_v11 }
 0x33b   : > { %v1289_v13 = vpop.f32.mrf.mxu2 }
 0x33c   : > { %v1153_v14 = vmul.f32 1.442695, %v1152_v12 }
 0x33e   : > { %3137 = vpow2.f32 %v1153_v14 }
 0x344   : > { %v3138_v18 = vpop.eup %3137 }
 0x345   : > { %v1155_v19 = vsel %vm1148_vm6, %v3138_v18, 0.0 }
 0x346   : > { %1156 = vadd.xlane.f32.xlu1 %v1155_v19  ;;  %v2882_v19 = vld [vmem:[%s4001_s12 + $0x38] sm:$0xff] }
 0x347   : > { %1478 = vmatpush.bf16.msrb.mxu1 %v2882_v19  ;;  %v2899_v19 = vld [vmem:[%s4024_s17 + $0x84] sm:$0xf] }
 0x349   : > { %1231 = vrot.lane.b32.xlu0 %v1230_v21, %s3637_s28  ;;  %v2881_v21 = vld [vmem:[%s4001_s12 + $0x30] sm:$0xff] }
 0x34b   : > { %1479 = vmatpush.bf16.msrb.mxu1 %v2881_v21 }
 0x35f   : > { %1345 = vrot.lane.b32.xlu1 %v1269_v50, %s3638_s3 }
 0x3a8   : > { %v1293_v22 = vpop.xlane.xlu0 %1292 }
 0x3a9   : > { %v1294_v34 = vsub.f32 %v1287_v9, %v1293_v22 }
 0x3ab   : > { %v1295_v36 = vmul.f32 1.442695, %v1294_v34 }
 0x3b9   : > { %v1157_v23 = vpop.xlane.xlu1 %1156 }
 0x3ba   : > { %3139 = vrcp.f32 %v1157_v23  ;;  %v2880_v23 = vld [vmem:[%s4001_s12 + $0x28] sm:$0xff] }
 0x3bb   : > { %v1232_v24 = vpop.permute.xlu0 %1231  ;;  %3141 = vpow2.f32 %v1295_v36  ;;  %1480 = vmatpush.bf16.msrb.mxu1 %v2880_v23  ;;  %v3129_v36 = vld [vmem:[%s709_s10] ss:$0 sm:$0xff]  ;;  %v2662_v23 = vld [vmem:[%s4024_s17 + $0x88] sm:$0xf] }
 0x3bc   : > { %v1237_v25 = vsel %vm1164_vm5, %v1232_v24, 0  ;;  %v2879_v24 = vld [vmem:[%s4001_s12 + $0x20] sm:$0xff] }
 0x3bd   : > { %1246 = vmatpush.bf16.msrb.mxu0 %v1237_v25 }
 0x3bf   : > { %1481 = vmatpush.bf16.msrb.mxu1 %v2879_v24  ;;  %v2902_v24 = vld [vmem:[%s4024_s17 + $0x94] sm:$0xf0] }
 0x3c0   : > { %v3140_v26 = vpop.eup %3139 }
 0x3c1   : > { %v1159_v27 = vmul.f32 %v3140_v26, %v3138_v18  ;;  %v3142_v39 = vpop.eup %3141 }
 0x3c2   : > { %v1297_v41 = vsel %vm1148_vm6, %v3142_v39, 0.0 }
 0x3c3   : > { %v1160_v28 = vpack.c.bf16 %v1159_v27, %v1159_v27 }
 0x3c5   : > { %2549 = vmatmul.msk.bf16.vlgmr.msrb.gmra.mxu3 %vm1148_vm6, %v1160_v28  ;;  %v2878_v28 = vld [vmem:[%s4001_s12 + $0x18] sm:$0xff] }
 0x3c6   : > { %1482 = vmatpush.bf16.msrb.mxu1 %v2878_v28  ;;  %v2664_v28 = vld [vmem:[%s4024_s17 + $0x98] sm:$0xf0] }
 0x3d1   : > { %v1346_v29 = vpop.permute.xlu1 %1345 }
 0x3d2   : > { %v1351_v30 = vsel %vm1128_vm4, %v1346_v29, 0  ;;  %v2877_v29 = vld [vmem:[%s4001_s12 + $0x10] sm:$0xff] }
 0x3d3   : > { %1360 = vmatpush.bf16.xpose.msrb.mxu3 %v1351_v30  ;;  %1483 = vmatpush.bf16.msrb.mxu1 %v2877_v29  ;;  %v2876_v30 = vld [vmem:[%s4001_s12 + $0x8] sm:$0xff] }
 0x3d5   : > { %2550 = vmatmul.msk.bf16.vlgmr.msra.gmra.mxu3 %vm1128_vm4, %v1191_v2 }
 0x3d7   : > { %1484 = vmatpush.bf16.msrb.mxu1 %v2876_v30  ;;  %v2638_v30 = vld [vmem:[%s4024_s17 + $0x60] sm:$0xf] }
 0x3e5   : > { %2554 = vmatmul.msk.bf16.vlgmr.msrb.gmra.mxu3 %vm1128_vm4, %v1341_v31  ;;  %v2875_v31 = vld [vmem:[%s4001_s12] sm:$0xff] }
 0x3e6   : > { %1485 = vmatpush.bf16.msrb.mxu1 %v2875_v31  ;;  %v2897_v31 = vld [vmem:[%s4024_s17 + $0x6c] sm:$0xf0] }
 0x448   : > { %v1177_v32 = vpop.f32.mrf.mxu3 }
 0x449   : > { %v1181_v33 = vpack.c.bf16 %v1177_v32, %v1177_v32 }
 0x44b   : > { %1183 = vst.msk [vmem:[#allocation3] sm:$0xf] %vm1182_vm7, %v1181_v33 }
 0x450   : > { %v1179_v35 = vpop.f32.mrf.mxu3 }
 0x458   : > { %v1212_v37 = vpop.f32.mrf.mxu3 }
 0x459   : > { %v1216_v38 = vsel %vm1148_vm6, %v1212_v37, -inf }
 0x45a   : > { %1217 = vmax.xlane.f32.xlu2 %v1216_v38 }
 0x460   : > { %v1214_v40 = vpop.f32.mrf.mxu3 }
 0x462   : > { %1298 = vadd.xlane.f32.xlu2 %v1297_v41  ;;  %v2702_v41 = vld [vmem:[%s4024_s17 + $0xe0] sm:$0xf] }
 0x468   : > { %v1362_v42 = vpop.f32.mrf.mxu3 }
 0x469   : > { %v1366_v43 = vsel %vm1148_vm6, %v1362_v42, -inf }
 0x46a   : > { %1367 = vmax.xlane.f32.xlu1 %v1366_v43  ;;  %v2911_v43 = vld [vmem:[%s4024_s17 + $0xe4] sm:$0xf] }
 0x470   : > { %v1364_v44 = vpop.f32.mrf.mxu3 }
 0x4cd   : > { %v1218_v45 = vpop.xlane.xlu2 %1217 }
 0x4ce   : > { %v1219_v46 = vsub.f32 %v1212_v37, %v1218_v45  ;;  %v2704_v45 = vld [vmem:[%s4024_s17 + $0xf0] sm:$0xf0] }
 0x4d0   : > { %v1220_v47 = vmul.f32 1.442695, %v1219_v46  ;;  %v2710_v46 = vld [vmem:[%s4024_s17 + $0xe8] sm:$0xf] }
 0x4d2   : > { %3143 = vpow2.f32 %v1220_v47  ;;  %v2914_v47 = vld [vmem:[%s4024_s17 + $0xf4] sm:$0xf0] }
 0x4d5   : > { %v1299_v60 = vpop.xlane.xlu2 %1298 }
 0x4d8   : > { %v3144_v48 = vpop.eup %3143 }
 0x4d9   : > { %v1222_v49 = vsel %vm1148_vm6, %v3144_v48, 0.0 }
 0x4da   : > { %1223 = vadd.xlane.f32.xlu2 %v1222_v49  ;;  %v2711_v49 = vor.u32 %v2914_v47, %v2710_v46  ;;  %v2624_v47 = vld [vmem:[%s4024_s17 + $0x50] sm:$0xf0] }
 0x4dd   : > { %v1368_v20 = vpop.xlane.xlu1 %1367 }
 0x4de   : > { %v1369_v50 = vsub.f32 %v1362_v42, %v1368_v20  ;;  %v2913_v42 = vld [vmem:[%s4024_s17 + $0xec] sm:$0xf0]  ;;  %v2912_v20 = vld [vmem:[%s4024_s17 + $0xec] sm:$0xf] }
 0x4df   : > { %v2703_v44 = vor.u32 %v2913_v42, %v2702_v41  ;;  %v2648_v41 = vld [vmem:[%s4024_s17 + $0x78] sm:$0xf0] }
 0x4e0   : > { %v1370_v51 = vmul.f32 1.442695, %v1369_v50  ;;  %v2712_v50 = vld [vmem:[%s4024_s17 + $0xf8] sm:$0xf0] }
 0x4e2   : > { %3145 = vpow2.f32 %v1370_v51 }
 0x4e3   : > { %3147 = vrcp.f32 %v1299_v60  ;;  %v2694_v60 = vld [vmem:[%s4024_s17 + $0xc8] sm:$0xf] }
 0x4e8   : > { %v3146_v52 = vpop.eup %3145 }
 0x4e9   : > { %v1372_v53 = vsel %vm1148_vm6, %v3146_v52, 0.0  ;;  %v3148_v62 = vpop.eup %3147 }
 0x4ea   : > { %1373 = vadd.xlane.f32.xlu1 %v1372_v53  ;;  %v1301_v0 = vmul.f32 %v3148_v62, %v3142_v39 }
 0x4ec   : > { %v1302_v6 = vpack.c.bf16 %v1301_v0, %v1301_v0  ;;  %v2908_v0 = vld [vmem:[%s4024_s17 + $0xcc] sm:$0xf] }
 0x4f2   : > { %1306 = vrot.lane.b32.xlu2 %v1305_v56, %s3636_s20  ;;  %v2909_v56 = vld [vmem:[%s4024_s17 + $0xcc] sm:$0xf0] }
 0x4f3   : > { %v2687_v58 = vor.u32 %v2909_v56, %v2686_v55  ;;  %v2889_v55 = vld [vmem:[%s4024_s17 + $0x2c] sm:$0xf0]  ;;  %v2887_v56 = vld [vmem:[%s4024_s17 + $0x24] sm:$0xf] }
 0x503   : > { %1381 = vrot.lane.b32.xlu1 %v1380_v59, %s3638_s3  ;;  %v2688_v59 = vld [vmem:[%s4024_s17 + $0xd0] sm:$0xf0] }
 0x504   : > { %v2691_v62 = vor.u32 %v2907_v57, %v2688_v59  ;;  %v2614_v59 = vld [vmem:[%s4024_s17 + $0x28] sm:$0xf] }
 0x54d   : > { %v1224_v61 = vpop.xlane.xlu2 %1223 }
 0x54e   : > { %3149 = vrcp.f32 %v1224_v61  ;;  %v2910_v61 = vld [vmem:[%s4024_s17 + $0xd4] sm:$0xf0] }
 0x554   : > { %v3150_v63 = vpop.eup %3149 }
 0x555   : > { %v1226_v2 = vmul.f32 %v3150_v63, %v3144_v48  ;;  %v1307_v3 = vpop.permute.xlu2 %1306  ;;  %v2707_v48 = vor.u32 %v2911_v43, %v2704_v45  ;;  %v2695_v63 = vor.u32 %v2910_v61, %v2694_v60  ;;  %v2622_v43 = vld [vmem:[%s4024_s17 + $0x40] sm:$0xf]  ;;  %v2891_v45 = vld [vmem:[%s4024_s17 + $0x44] sm:$0xf]  ;;  %v2890_v60 = vld [vmem:[%s4024_s17 + $0x34] sm:$0xf0] }
 0x556   : > { %v1312_v4 = vsel %vm1164_vm5, %v1307_v3, 0 }
 0x557   : > { %1321 = vmatpush.bf16.msra.mxu2 %v1312_v4  ;;  %v1227_v5 = vpack.c.bf16 %v1226_v2, %v1226_v2  ;;  %1738 = vmatpush.bf16.msra.mxu3 %v2707_v48  ;;  %v2696_v2 = vld [vmem:[%s4024_s17 + $0xd8] sm:$0xf0]  ;;  %v2670_v4 = vld [vmem:[%s4024_s17 + $0xa0] sm:$0xf]  ;;  %v2630_v48 = vld [vmem:[%s4024_s17 + $0x48] sm:$0xf] }
 0x558   : > { %v2699_v3 = vor.u32 %v2908_v0, %v2696_v2  ;;  %v2616_v0 = vld [vmem:[%s4024_s17 + $0x38] sm:$0xf0]  ;;  %v2590_v2 = vld [vmem:[%s4024_s17] sm:$0xf] }
 0x559   : > { %2551 = vmatmul.msk.bf16.vlgmr.msrb.gmra.mxu0 %vm1148_vm6, %v1227_v5  ;;  %v2905_v5 = vld [vmem:[%s4024_s17 + $0xac] sm:$0xf0] }
 0x55a   : > { %2553 = vmatmul.msk.bf16.vlgmr.msra.gmra.mxu2 %vm1148_vm6, %v1302_v6  ;;  %v2903_v6 = vld [vmem:[%s4024_s17 + $0xa4] sm:$0xf] }
 0x55b   : > { %1725 = vmatpush.bf16.msrb.mxu2 %v2703_v44  ;;  %1739 = vmatpush.bf16.msra.mxu3 %v2691_v62  ;;  %v2893_v44 = vld [vmem:[%s4024_s17 + $0x4c] sm:$0xf0]  ;;  %v2615_v62 = vor.u32 %v2890_v60, %v2614_v59  ;;  %v2916_v59 = vld [vmem:[%s4044_s5 + $0x8] sm:$0xff] }
 0x55c   : > { %v2623_v46 = vor.u32 %v2893_v44, %v2622_v43  ;;  %v3130_v44 = vld [vmem:[%s736_s1] ss:$0 sm:$0xff]  ;;  %v2924_v60 = vld [vmem:[%s4044_s5 + $0x48] sm:$0xff] }
 0x55d   : > { %v1374_v7 = vpop.xlane.xlu1 %1373 }
 0x55e   : > { %3151 = vrcp.f32 %v1374_v7  ;;  %v2671_v7 = vor.u32 %v2905_v5, %v2670_v4  ;;  %v2885_v4 = vld [vmem:[%s4024_s17 + $0xc] sm:$0xf0]  ;;  %v2883_v5 = vld [vmem:[%s4024_s17 + $0x4] sm:$0xf] }
 0x55f   : > { %1726 = vmatpush.bf16.msrb.mxu2 %v2687_v58  ;;  %v2608_v58 = vld [vmem:[%s4024_s17 + $0x30] sm:$0xf0] }
 0x560   : > { %v2611_v61 = vor.u32 %v2887_v56, %v2608_v58  ;;  %v2925_v56 = vld [vmem:[%s4044_s5 + $0x50] sm:$0xff]  ;;  %v2939_v58 = vld [vmem:[%s4044_s5 + $0xc0] sm:$0xff] }
 0x563   : > { %1727 = vmatpush.bf16.msrb.mxu2 %v2671_v7  ;;  %v2591_v7 = vor.u32 %v2885_v4, %v2590_v2 }
 0x564   : > { %v3152_v8 = vpop.eup %3151 }
 0x565   : > { %v1376_v9 = vmul.f32 %v3152_v8, %v3146_v52  ;;  %v2672_v8 = vld [vmem:[%s4024_s17 + $0xb0] sm:$0xf0] }
 0x567   : > { %v1377_v12 = vpack.c.bf16 %v1376_v9, %v1376_v9  ;;  %v2678_v9 = vld [vmem:[%s4024_s17 + $0xa8] sm:$0xf] }
 0x575   : > { %v1382_v10 = vpop.permute.xlu1 %1381 }
 0x576   : > { %v1387_v11 = vsel %vm1164_vm5, %v1382_v10, 0  ;;  %v2906_v10 = vld [vmem:[%s4024_s17 + $0xb4] sm:$0xf0] }
 0x577   : > { %1396 = vmatpush.bf16.msra.mxu0 %v1387_v11  ;;  %v2675_v11 = vor.u32 %v2903_v6, %v2672_v8  ;;  %v2592_v6 = vld [vmem:[%s4024_s17 + $0x10] sm:$0xf0] }
 0x578   : > { %v2595_v8 = vor.u32 %v2883_v5, %v2592_v6 }
 0x579   : > { %1740 = vmatpush.bf16.msra.mxu3 %v2675_v11  ;;  %v2884_v11 = vld [vmem:[%s4024_s17 + $0xc] sm:$0xf] }
 0x57a   : > { %2555 = vmatmul.msk.bf16.vlgmr.msra.gmra.mxu0 %vm1148_vm6, %v1377_v12  ;;  %v2679_v12 = vor.u32 %v2906_v10, %v2678_v9  ;;  %v2598_v9 = vld [vmem:[%s4024_s17 + $0x8] sm:$0xf]  ;;  %v2886_v10 = vld [vmem:[%s4024_s17 + $0x14] sm:$0xf0] }
 0x57b   : > { %1751 = vmatpush.bf16.msrb.mxu0 %v2711_v49  ;;  %v2894_v49 = vld [vmem:[%s4024_s17 + $0x54] sm:$0xf0] }
 0x57f   : > { %1752 = vmatpush.bf16.msrb.mxu0 %v2695_v63  ;;  %v2888_v63 = vld [vmem:[%s4024_s17 + $0x2c] sm:$0xf] }
 0x583   : > { %1753 = vmatpush.bf16.msrb.mxu0 %v2679_v12  ;;  %v2599_v12 = vor.u32 %v2886_v10, %v2598_v9 }
 0x5d6   : > { %v1248_v13 = vpop.f32.mrf.mxu0 }
 0x5d7   : > { %v1252_v14 = vpack.c.bf16 %v1248_v13, %v1248_v13  ;;  %v2904_v13 = vld [vmem:[%s4024_s17 + $0xac] sm:$0xf] }
 0x5d9   : > { %1254 = vrot.lane.b32.xlu0 %v1252_v14, %s3638_s3  ;;  %v2680_v14 = vld [vmem:[%s4024_s17 + $0xb8] sm:$0xf0] }
 0x5dd   : > { %v1323_v15 = vpop.f32.mrf.mxu2 }
 0x5de   : > { %v1327_v16 = vpack.c.bf16 %v1323_v15, %v1323_v15  ;;  %v1250_v18 = vpop.f32.mrf.mxu0  ;;  %v2683_v15 = vor.u32 %v2904_v13, %v2680_v14  ;;  %v2600_v13 = vld [vmem:[%s4024_s17 + $0x18] sm:$0xf0] }
 0x5df   : > { %v2901_v18 = vld [vmem:[%s4024_s17 + $0x8c] sm:$0xf0]  ;;  %v2603_v14 = vor.u32 %v2884_v11, %v2600_v13 }
 0x5e1   : > { %1329 = vrot.lane.b32.xlu0 %v1327_v16, %s3636_s20  ;;  %v2654_v16 = vld [vmem:[%s4024_s17 + $0x80] sm:$0xf] }
 0x5e2   : > { %v2655_v21 = vor.u32 %v2901_v18, %v2654_v16  ;;  %v2938_v16 = vld [vmem:[%s4044_s5 + $0xb8] sm:$0xff] }
 0x5e3   : > { %v2946_v18 = vld [vmem:[%s4044_s5 + $0xf8] sm:$0xff] }
 0x5e4   : > { %1728 = vmatpush.bf16.msrb.mxu2 %v2655_v21  ;;  %v2922_v21 = vld [vmem:[%s4044_s5 + $0x38] sm:$0xff] }
 0x5e5   : > { %v1325_v22 = vpop.f32.mrf.mxu2 }
 0x5e6   : > { %v2656_v22 = vld [vmem:[%s4024_s17 + $0x90] sm:$0xf0] }
 0x5f7   : > { %v1398_v25 = vpop.f32.mrf.mxu0 }
 0x5f8   : > { %v1402_v26 = vpack.c.bf16 %v1398_v25, %v1398_v25  ;;  %v2659_v25 = vor.u32 %v2899_v19, %v2656_v22  ;;  %v2930_v22 = vld [vmem:[%s4044_s5 + $0x78] sm:$0xff] }
 0x5fa   : > { %1404 = vrot.lane.b32.xlu2 %v1402_v26, %s3637_s28  ;;  %v2663_v26 = vor.u32 %v2902_v24, %v2662_v23  ;;  %1741 = vmatpush.bf16.msra.mxu3 %v2659_v25  ;;  %v2937_v23 = vld [vmem:[%s4044_s5 + $0xb0] sm:$0xff] }
 0x5fb   : > { %v2945_v24 = vld [vmem:[%s4044_s5 + $0xf0] sm:$0xff] }
 0x5fc   : > { %1754 = vmatpush.bf16.msrb.mxu0 %v2663_v26  ;;  %v2921_v26 = vld [vmem:[%s4044_s5 + $0x30] sm:$0xff] }
 0x5ff   : > { %v1400_v27 = vpop.f32.mrf.mxu0 }
 0x600   : > { %v2900_v27 = vld [vmem:[%s4024_s17 + $0x8c] sm:$0xf] }
 0x601   : > { %v2667_v29 = vor.u32 %v2900_v27, %v2664_v28  ;;  %v2929_v27 = vld [vmem:[%s4044_s5 + $0x70] sm:$0xff]  ;;  %v2944_v28 = vld [vmem:[%s4044_s5 + $0xe8] sm:$0xff] }
 0x64b   : > { %v1255_v32 = vpop.permute.xlu0 %1254 }
 0x64c   : > { %1258 = vst.msk [vmem:[#allocation3] sm:$0xf] %vm1257_vm8, %v1255_v32  ;;  %v2895_v32 = vld [vmem:[%s4024_s17 + $0x64] sm:$0xf] }
 0x653   : > { %v1330_v33 = vpop.permute.xlu0 %1329 }
 0x654   : > { %1333 = vst.msk [vmem:[#allocation3] sm:$0xf] %vm1332_vm9, %v1330_v33  ;;  %v1405_v34 = vpop.permute.xlu2 %1404  ;;  %v2639_v33 = vor.u32 %v2897_v31, %v2638_v30  ;;  %v2928_v30 = vld [vmem:[%s4044_s5 + $0x68] sm:$0xff]  ;;  %v2935_v31 = vld [vmem:[%s4044_s5 + $0xa0] sm:$0xff] }
 0x655   : > { %1408 = vst.msk [vmem:[#allocation3] sm:$0xf] %vm1407_vm10, %v1405_v34  ;;  %v2640_v34 = vld [vmem:[%s4024_s17 + $0x70] sm:$0xf0] }
 0x656   : > { %1729 = vmatpush.bf16.msrb.mxu2 %v2639_v33 }
 0x65a   : > { %1730 = vmatpush.bf16.msrb.mxu2 %v2623_v46 }
 0x65c   : > { %v1409_v35 = vld [vmem:[#allocation3] sm:$0xf] }
 0x65d   : > { %1486 = vmatmul.bf16.vlgmr.msrb.gmra.mxu1 %v1409_v35  ;;  %v2646_v35 = vld [vmem:[%s4024_s17 + $0x68] sm:$0xf] }
 0x6da   : > { %v1487_v37 = vpop.f32.mrf.mxu1 }
 0x6db   : > { %v1488_v38 = vadd.f32 %v3129_v36, %v1487_v37  ;;  %v2898_v36 = vld [vmem:[%s4024_s17 + $0x74] sm:$0xf0]  ;;  %v2643_v37 = vor.u32 %v2895_v32, %v2640_v34  ;;  %v2943_v32 = vld [vmem:[%s4044_s5 + $0xe0] sm:$0xff] }
 0x6dc   : > { %v2919_v34 = vld [vmem:[%s4044_s5 + $0x20] sm:$0xff] }
 0x6dd   : > { %v4167_v39 = vadd.f32 %v1488_v38, %v4054_v1  ;;  %v2715_v1 = vor.u32 %v2912_v20, %v2712_v50  ;;  %v2647_v38 = vor.u32 %v2898_v36, %v2646_v35  ;;  %1742 = vmatpush.bf16.msra.mxu3 %v2643_v37  ;;  %v2627_v20 = vor.u32 %v2891_v45, %v2624_v47  ;;  %v2927_v35 = vld [vmem:[%s4044_s5 + $0x60] sm:$0xff]  ;;  %v3131_v47 = vld [vmem:[%s4429_s27] ss:$0 sm:$0xff] }
 0x6de   : > { %v2631_v50 = vor.u32 %v2894_v49, %v2630_v48 }
 0x6df   : > { %1494 = vadd.xlane.f32.xlu0 %v4167_v39  ;;  %1764 = vmatpush.bf16.msra.mxu1 %v2715_v1  ;;  %v2892_v1 = vld [vmem:[%s4024_s17 + $0x4c] sm:$0xf] }
 0x6e0   : > { %1755 = vmatpush.bf16.msrb.mxu0 %v2647_v38  ;;  %v2934_v38 = vld [vmem:[%s4044_s5 + $0x98] sm:$0xff] }
 0x6e1   : > { %1743 = vmatpush.bf16.msra.mxu3 %v2627_v20 }
 0x6e2   : > { %v1489_v40 = vpop.f32.mrf.mxu1 }
 0x6e3   : > { %1765 = vmatpush.bf16.msra.mxu1 %v2699_v3  ;;  %v2896_v40 = vld [vmem:[%s4024_s17 + $0x6c] sm:$0xf]  ;;  %v2619_v3 = vor.u32 %v2888_v63, %v2616_v0  ;;  %v1555_v63 = vld [vmem:[%s4042_s30] sm:$0xf]  ;;  %s4432_s30 = sld [smem:[#allocation56_spill]] }
 0x6e4   : > { %v2651_v42 = vor.u32 %v2896_v40, %v2648_v41  ;;  %1756 = vmatpush.bf16.msrb.mxu0 %v2631_v50  ;;  %v2942_v40 = vld [vmem:[%s4044_s5 + $0xd8] sm:$0xff]  ;;  %v2933_v50 = vld [vmem:[%s4044_s5 + $0x90] sm:$0xff]  ;;  %v1559_v0 = vperm.slane %v1555_v63, 2  ;;  %v1560_v2 = vperm.slane %v1555_v63, 3 }
 0x6e5   : > { %1744 = vmatpush.bf16.msra.mxu3 %v2611_v61  ;;  %v2915_v61 = vld [vmem:[%s4044_s5] sm:$0xff] }
 0x6e7   : > { %1766 = vmatpush.bf16.msra.mxu1 %v2683_v15 }
 0x6e8   : > { %1757 = vmatpush.bf16.msrb.mxu0 %v2615_v62  ;;  %v2923_v62 = vld [vmem:[%s4044_s5 + $0x40] sm:$0xff] }
 0x6e9   : > { %1745 = vmatpush.bf16.msra.mxu3 %v2595_v8  ;;  %v1558_v8 = vperm.slane %v1555_v63, 1  ;;  %s4433_s21 = smov %s4432_s30 }
 0x6ea   : > { %s3505_s23 = scalar_lea.hbm %s4433_s21, 16 }
 0x6eb   : > { %1767 = vmatpush.bf16.msra.mxu1 %v2667_v29  ;;  %v2920_v29 = vld [vmem:[%s4044_s5 + $0x28] sm:$0xff] }
 0x6ec   : > { %1758 = vmatpush.bf16.msrb.mxu0 %v2599_v12 }
 0x6ed   : > { %2074 = vmatpush.bf16.msrb.mxu3 %v2930_v22 }
 0x6ef   : > { %1768 = vmatpush.bf16.msra.mxu1 %v2651_v42 }
 0x6f0   : > { %2087 = vmatpush.bf16.msra.mxu0 %v2938_v16 }
 0x6f1   : > { %2075 = vmatpush.bf16.msrb.mxu3 %v2929_v27 }
 0x6f4   : > { %2088 = vmatpush.bf16.msra.mxu0 %v2937_v23 }
 0x6f5   : > { %2076 = vmatpush.bf16.msrb.mxu3 %v2928_v30 }
 0x6f9   : > { %2077 = vmatpush.bf16.msrb.mxu3 %v2927_v35 }
 0x752   : > { %v1495_v51 = vpop.xlane.xlu0 %1494 }
 0x753   : > { %v1496_v52 = vmul.f32 %v1495_v51, %v4063_v17  ;;  %v2632_v51 = vld [vmem:[%s4024_s17 + $0x58] sm:$0xf0] }
 0x755   : > { %v4180_v53 = vsub.f32 %v4167_v39, %v1496_v52  ;;  %v2635_v52 = vor.u32 %v2892_v1, %v2632_v51  ;;  %v2941_v1 = vld [vmem:[%s4044_s5 + $0xd0] sm:$0xff]  ;;  %v2926_v51 = vld [vmem:[%s4044_s5 + $0x58] sm:$0xff] }
 0x756   : > { %2078 = vmatpush.bf16.msrb.mxu3 %v2926_v51 }
 0x757   : > { %v1498_v54 = vmul.f32 %v4180_v53, %v4180_v53  ;;  %1769 = vmatpush.bf16.msra.mxu1 %v2635_v52  ;;  %v2932_v52 = vld [vmem:[%s4044_s5 + $0x88] sm:$0xff] }
 0x759   : > { %1499 = vadd.xlane.f32.xlu1 %v1498_v54  ;;  %v2606_v54 = vld [vmem:[%s4024_s17 + $0x20] sm:$0xf]  ;;  %s2126_s17 = scalar_lea.hbm %s4432_s30, %s2845_s25 }
 0x75a   : > { %v2607_v57 = vor.u32 %v2889_v55, %v2606_v54  ;;  %v2940_v54 = vld [vmem:[%s4044_s5 + $0xc8] sm:$0xff]  ;;  %v2917_v55 = vld [vmem:[%s4044_s5 + $0x10] sm:$0xff]  ;;  %2079 = vmatpush.bf16.msrb.mxu3 %v2925_v56  ;;  %s2130_s2 = sshll.u32 %s2126_s17, 4  ;;  %s2131_s2 = int_to_ptr.hbm [resolvable:$true] %s2130_s2 }
 0x75b   : > { %1770 = vmatpush.bf16.msra.mxu1 %v2619_v3  ;;  %s3499_s15 = sshra.s32 %s2131_s2, 4  ;;  %s3500_s15 = int_to_ptr.hbm [resolvable:$true] %s3499_s15 }
 0x75c   : > { %1731 = vmatpush.bf16.msrb.mxu2 %v2607_v57  ;;  %v2931_v57 = vld [vmem:[%s4044_s5 + $0x80] sm:$0xff]  ;;  %s3501_s6 = scalar_lea.hbm %s3500_s15, 8  ;;  %p3506_p3 = scmp.lt.s32.totalorder %s3500_s15, %s4433_s21 }
 0x75d   : > { %p3502_p10 = scmp.ne.s32.totalorder %s3500_s15, %s3501_s6  ;;  %p3507_p5 = scmp.lt.s32.totalorder %s3505_s23, %s3501_s6 }
 0x75e   : > { %2080 = vmatpush.bf16.msrb.mxu3 %v2924_v60 }
 0x75f   : > { %1771 = vmatpush.bf16.msra.mxu1 %v2603_v14  ;;  %p3503_p11 = pnand %p3502_p10, %p3902_p12  ;;  %p3508_p6 = por %p3507_p5, %p3506_p3 }
 0x760   : > { %1732 = vmatpush.bf16.msrb.mxu2 %v2591_v7  ;;  %v1557_v7 = vperm.slane %v1555_v63, 0 }
 0x761   : > { %p3504_p0 = pneg %p3503_p11 }
 0x762   : > { %2081 = vmatpush.bf16.msrb.mxu3 %v2923_v62 }
 0x763   : > { %2100 = vmatpush.bf16.msrb.mxu1 %v2946_v18  ;;  %p3509_p8 = pnand %p3508_p6, %p3504_p0 }
 0x764   : > { %2061 = vmatpush.bf16.msra.mxu2 %v2922_v21 }
 0x767   : > { %2101 = vmatpush.bf16.msrb.mxu1 %v2945_v24 }
 0x768   : > { %2062 = vmatpush.bf16.msra.mxu2 %v2921_v26 }
 0x76b   : > { %2102 = vmatpush.bf16.msrb.mxu1 %v2944_v28 }
 0x76c   : > { %2063 = vmatpush.bf16.msra.mxu2 %v2920_v29 }
 0x76f   : > { %2103 = vmatpush.bf16.msrb.mxu1 %v2943_v32 }
 0x770   : > { %2064 = vmatpush.bf16.msra.mxu2 %v2919_v34 }
 0x773   : > { %2104 = vmatpush.bf16.msrb.mxu1 %v2942_v40 }
 0x777   : > { %2105 = vmatpush.bf16.msrb.mxu1 %v2941_v1 }
 0x77b   : > { %2106 = vmatpush.bf16.msrb.mxu1 %v2940_v54 }
 0x77f   : > { %2107 = vmatpush.bf16.msrb.mxu1 %v2939_v58 }
 0x7cc   : > { %v1500_v15 = vpop.xlane.xlu1 %1499 }
 0x7cd   : > { %v1501_v19 = vmul.f32 %v1500_v15, %v4063_v17  ;;  %v2936_v17 = vld [vmem:[%s4044_s5 + $0xa8] sm:$0xff] }
 0x7ce   : > { %2089 = vmatpush.bf16.msra.mxu0 %v2936_v17 }
 0x7cf   : > { %v1502_v25 = vadd.f32 1e-05, %v1501_v19 }
 0x7d1   : > { %3153 = vrsqrt.f32 %v1502_v25  ;;  %vm1509_vm12 = vweird.f32 %v1502_v25 }
 0x7d2   : > { %2090 = vmatpush.bf16.msra.mxu0 %v2935_v31 }
 0x7d6   : > { %2091 = vmatpush.bf16.msra.mxu0 %v2934_v38 }
 0x7d7   : > { %v3154_v33 = vpop.eup %3153 }
 0x7d8   : > { %v1504_v36 = vmul.f32 %v3154_v33, %v1502_v25  ;;  %vm1510_vm11 = vweird.f32 %v3154_v33 }
 0x7d9   : > { %vm1511_vm13 = vmor %vm1509_vm12, %vm1510_vm11 }
 0x7da   : > { %v1505_v37 = vmul.f32 %v3154_v33, %v1504_v36  ;;  %2092 = vmatpush.bf16.msra.mxu0 %v2933_v50  ;;  %v3132_v36 = vld [vmem:[%s867_s8] ss:$0 sm:$0xff] }
 0x7dc   : > { %v1506_v41 = vmul.f32 0.5, %v1505_v37 }
 0x7de   : > { %v1507_v42 = vsub.f32 1.5, %v1506_v41  ;;  %2093 = vmatpush.bf16.msra.mxu0 %v2932_v52 }
 0x7e0   : > { %v1508_v43 = vmul.f32 %v3154_v33, %v1507_v42 }
 0x7e2   : > { %v1512_v45 = vsel %vm1511_vm13, %v3154_v33, %v1508_v43  ;;  %2094 = vmatpush.bf16.msra.mxu0 %v2931_v57 }
 0x7e3   : > { %v1513_v46 = vmul.f32 %v1512_v45, %v4180_v53  ;;  %v2918_v53 = vld [vmem:[%s4044_s5 + $0x18] sm:$0xff] }
 0x7e4   : > { %2065 = vmatpush.bf16.msra.mxu2 %v2918_v53 }
 0x7e5   : > { %v1517_v48 = vmul.f32 %v3130_v44, %v1513_v46 }
 0x7e7   : > { %v1521_v49 = vadd.f32 %v3131_v47, %v1517_v48 }
 0x7e8   : > { %2066 = vmatpush.bf16.msra.mxu2 %v2917_v55 }
 0x7e9   : > { %v1522_v20 = vpack.c.bf16 %v1521_v49, %v1521_v49 }
 0x7eb   : > { %1733 = vmatmul.bf16.vlgmr.msrb.gmra.mxu2 %v1522_v20  ;;  %1746 = vmatmul.bf16.vlgmr.msra.gmra.mxu3 %v1522_v20 }
 0x7ec   : > { %1759 = vmatmul.bf16.vlgmr.msrb.gmra.mxu0 %v1522_v20  ;;  %1772 = vmatmul.bf16.vlgmr.msra.gmra.mxu1 %v1522_v20 }
 0x7ed   : > { %2067 = vmatpush.bf16.msra.mxu2 %v2916_v59 }
 0x7f1   : > { %2068 = vmatpush.bf16.msra.mxu2 %v2915_v61 }
 0x869   : > { %v1760_v3 = vpop.f32.mrf.mxu0  ;;  %v1773_v4 = vpop.f32.mrf.mxu1 }
 0x86a   : > { %v1761_v5 = vadd.f32 %v1760_v3, %v1559_v0  ;;  %v1774_v6 = vadd.f32 %v1773_v4, %v1560_v2 }
 0x86c   : > { %v1779_v9 = vmax.f32 %v1761_v5, 0.0  ;;  %v1780_v10 = vmax.f32 %v1774_v6, 0.0 }
 0x86e   : > { %v1782_v11 = vpack.c.bf16 %v1780_v10, %v1779_v9  ;;  %v1734_v12 = vpop.f32.mrf.mxu2  ;;  %v1747_v13 = vpop.f32.mrf.mxu3 }
 0x86f   : > { %v1735_v14 = vadd.f32 %v1734_v12, %v1557_v7  ;;  %v1748_v15 = vadd.f32 %v1747_v13, %v1558_v8 }
 0x870   : > { %v1859_v16 = vunpack.c.l.b16 %v1782_v11  ;;  %v1860_v18 = vunpack.c.h.b16 %v1782_v11 }
 0x871   : > { %v1777_v19 = vmax.f32 %v1735_v14, 0.0  ;;  %v1778_v21 = vmax.f32 %v1748_v15, 0.0  ;;  %v1762_v22 = vpop.f32.mrf.mxu0  ;;  %v1775_v23 = vpop.f32.mrf.mxu1 }
 0x872   : > { %v1863_v24 = vpack.c.b16 %v1859_v16, %v1859_v16  ;;  %v1864_v25 = vpack.c.b16 %v1860_v18, %v1860_v18 }
 0x873   : > { %v1781_v26 = vpack.c.bf16 %v1778_v21, %v1777_v19 }
 0x874   : > { %2095 = vmatmul.bf16.vlgmr.msra.gmra.mxu0 %v1863_v24  ;;  %2108 = vmatmul.bf16.vlgmr.msrb.gmra.mxu1 %v1864_v25 }
 0x875   : > { %v1857_v27 = vunpack.c.l.b16 %v1781_v26  ;;  %v1858_v17 = vunpack.c.h.b16 %v1781_v26 }
 0x876   : > { %v1736_v28 = vpop.f32.mrf.mxu2  ;;  %v1749_v29 = vpop.f32.mrf.mxu3 }
 0x877   : > { %v1861_v30 = vpack.c.b16 %v1857_v27, %v1857_v27  ;;  %v1862_v31 = vpack.c.b16 %v1858_v17, %v1858_v17 }
 0x879   : > { %2069 = vmatmul.bf16.vlgmr.msra.gmra.mxu2 %v1861_v30  ;;  %2082 = vmatmul.bf16.vlgmr.msrb.gmra.mxu3 %v1862_v31 }
 0x8f1   : > { %v2096_v32 = vpop.f32.mrf.mxu0  ;;  %v2109_v33 = vpop.f32.mrf.mxu1 }
 0x8f9   : > { %v2098_v34 = vpop.f32.mrf.mxu0  ;;  %v2111_v35 = vpop.f32.mrf.mxu1 }
 0x8fc   : > { %v2070_v37 = vpop.f32.mrf.mxu2  ;;  %v2083_v38 = vpop.f32.mrf.mxu3 }
 0x8fd   : > { %v2071_v40 = vadd.f32 %v3132_v36, %v2070_v37 }
 0x8ff   : > { %v2084_v41 = vadd.f32 %v2083_v38, %v2071_v40 }
 0x901   : > { %v2097_v42 = vadd.f32 %v2096_v32, %v2084_v41 }
 0x903   : > { %v2110_v43 = vadd.f32 %v2109_v33, %v2097_v42 }
 0x904   : > { %v2072_v44 = vpop.f32.mrf.mxu2  ;;  %v2085_v45 = vpop.f32.mrf.mxu3 }
 0x905   : > { %v2113_v46 = vadd.f32 %v2110_v43, %v4167_v39 }
 0x907   : > { %2114 = vst [vmem:[%s4048_s0] sm:$0xff] %v2113_v46 }
 0x908   : > { %3512 = shalt.err (!%p3509_p8)
}
 0x909   : > { %2987 = dma.vmem_to_hbm [thread:$0]  (%p3902_p12), %s2129_s22, 128, %s2131_s2, %s2116_s14  }
 0x90a PF: > { %s4434_s24 = sld [smem:[#allocation32_spill]]  ;;  %p3028_p9 = scmp.ge.s32.totalorder %s3627_s18, 2 }
 0x90c   : > { %p3024_p13 = pnand %p3028_p9, %p3910_p1 }
 0x90e   : > { %p3025_p2 = pneg %p3024_p13 }
 0x910   : > { %s2142_s20 = sand.u32 1, %s4434_s24  }
 0x911   : > { %s2143_s28 = scalar_lea.sflag [#allocation7], %s2142_s20 }
 0x912   : > { %3582 = dma.done.wait (%p3025_p2), %s2143_s28, 128  }
 0x913   : > { %3584 = vsyncadd (%p3025_p2), %s2143_s28, 4294967168  ;;  %s44_s18 = sadd.s32 1, %s3627_s18   ;;  %s4436_s3 = sld [smem:[#allocation31_spill]] }
 0x914   : > { %p41_p4 = scmp.ge.s32.totalorder %s44_s18, 6   ;;  %s4437_s27 = sld [smem:[#allocation40_spill]] }
 0x915   : > { %s4438_s7 = sld [smem:[#allocation33_spill]]  ;;  %s4443_s25 = smov %s3591_s26 }
 0x916   : > { %s4439_s30 = sld [smem:[#allocation41_spill]]  ;;  %s4445_s28 = smov %s3603_s29 }
 0x917   : > { %s4440_s15 = sld [smem:[#allocation36_spill]]  ;;  %s4447_s14 = smov %s3619_s16 }
 0x918   : > { %s4441_s19 = sld [smem:[#allocation38_spill]] }
 0x919   : > { %s4442_s17 = sld [smem:[#allocation39_spill]]  ;;  %s4444_s26 = smov %s4436_s3 }
 0x91a   :  { %43 = sbr.rel (!%p41_p4) target bundleno = 34 (0x22), region = 247 }
 0x91b   : > { %s4446_s29 = smov %s4438_s7 }
 0x91e   : > { %s4448_s16 = smov %s4441_s19 }
 0x91f   :  { %2149 = vsyncpa [#allocation6], 1 }
 0x920   :  { %2151 = vsyncpa [#allocation6 + $0x1], 1 }
 0x921   :  { %2152 = vsyncpa [#allocation9], 1 }
 0x922   :  { %2154 = vsyncpa [#allocation9 + $0x1], 1 }
 0x923   :  { %2155 = vsyncpa [#allocation12], 1 }
 0x924   :  { %2157 = vsyncpa [#allocation12 + $0x1], 1 }
 0x925   :  { %2158 = vsyncpa [#allocation15], 1 }
 0x926   :  { %2160 = vsyncpa [#allocation15 + $0x1], 1 }
 0x927   :  { %2161 = vsyncpa [#allocation18], 1 }
 0x928   :  { %2163 = vsyncpa [#allocation18 + $0x1], 1 }
 0x929   :  { %2164 = vsyncpa [#allocation21], 1 }
 0x92a   :  { %2166 = vsyncpa [#allocation21 + $0x1], 1 }
 0x92b   :  { %2167 = vsyncpa [#allocation7], 1 }
 0x92c   :  { %2169 = vsyncpa [#allocation7 + $0x1], 1 }

</bundles_post_ra>
